<compile_context>
chip_gen: v7x
topology: tpu7x:2x2x1
jax: 0.10.0
libtpu: 0.0.40
codegen_flags: <defaults>
</compile_context>

<pallas_src>
import functools

import jax
import jax.numpy as jnp
from jax.experimental import pallas as pl
from jax.experimental.pallas import tpu as pltpu


# ----------------------------------------------------------------------------
# Pallas kernel: one full ConvLSTM layer (all T steps) for one batch element
# per grid block.  grid = (B, T); state lives in VMEM scratch across T.
# ----------------------------------------------------------------------------
def _convlstm_layer_kernel(xp_ref, wx_ref, wh_ref, b_ref,      # inputs
                           hseq_ref, cfin_ref,                 # outputs
                           hpad_ref, c_ref,                    # VMEM scratch
                           *, ksize, H, W, Ch):
    # xp_ref  : (1, 1, H*W, k*k*Cin) bf16  -- im2col'ed x_t (pipelined over T)
    # wx_ref  : (k*k*Cin, 4*Ch)      bf16  -- x-path weight  (resident)
    # wh_ref  : (k*k*Ch,  4*Ch)      bf16  -- h-path weight  (resident)
    # b_ref   : (1, 4*Ch)            f32   -- bias           (resident)
    # hseq_ref: (1, 1, H*W, Ch)      f32   -- h_t written every step
    # cfin_ref: (1, H*W, Ch)         f32   -- final c (accumulator out_spec)
    # hpad_ref: (H+2p, W+2p, Ch)     f32   -- padded hidden state (scratch)
    # c_ref   : (H*W, Ch)            f32   -- cell state (scratch)
    k = ksize
    p = k // 2
    t = pl.program_id(1)

    @pl.when(t == 0)
    def _init():
        hpad_ref[...] = jnp.zeros_like(hpad_ref)   # halo stays zero forever
        c_ref[...] = jnp.zeros_like(c_ref)

    # ---- x-path gates: one MXU matmul, K = k*k*Cin -------------------------
    xp = xp_ref[0, 0]                                           # (H*W, k*k*Cin)
    gates = jnp.dot(xp, wx_ref[...], preferred_element_type=jnp.float32)

    # ---- h-path gates: im2col on the VMEM-resident padded h, one matmul ----
    hpad = hpad_ref[...].astype(jnp.bfloat16)                   # (Hp, Wp, Ch)
    taps = [hpad[ki:ki + H, kj:kj + W, :]
            for ki in range(k) for kj in range(k)]
    hcol = jnp.concatenate(taps, axis=-1).reshape(H * W, k * k * Ch)
    gates = gates + jnp.dot(hcol, wh_ref[...],
                            preferred_element_type=jnp.float32)
    gates = gates + b_ref[...]                                  # (1, 4Ch) bcast

    # ---- gate nonlinearities + state update, all f32 (VPU/EUP) -------------
    i_g = jax.nn.sigmoid(gates[:, 0 * Ch:1 * Ch])
    f_g = jax.nn.sigmoid(gates[:, 1 * Ch:2 * Ch])
    o_g = jax.nn.sigmoid(gates[:, 2 * Ch:3 * Ch])
    g_g = jnp.tanh(gates[:, 3 * Ch:4 * Ch])

    c_next = f_g * c_ref[...] + i_g * g_g
    h_next = o_g * jnp.tanh(c_next)

    c_ref[...] = c_next
    hpad_ref[p:p + H, p:p + W, :] = h_next.reshape(H, W, Ch)    # interior only
    hseq_ref[...] = h_next.reshape(1, 1, H * W, Ch)
    cfin_ref[...] = c_next.reshape(1, H * W, Ch)


def convlstm_layer(x_seq_nhwc, wx, wh, bias, *, ksize, hidden_dim):
    """Run a full ConvLSTM layer over time with a single fused Pallas kernel.

    x_seq_nhwc: (B, T, H, W, Cin) float32
    wx:  (k*k*Cin, 4*Ch) bf16     wh: (k*k*Ch, 4*Ch) bf16     bias: (4*Ch,) f32
    Returns h_seq (B, T, H, W, Ch) f32 and (h_T, c_T) each (B, H, W, Ch) f32.
    """
    B, T, H, W, Cin = x_seq_nhwc.shape
    Ch = hidden_dim
    k = ksize
    p = k // 2

    # One-time im2col of the whole input sequence (outside the recurrent loop).
    xp = jnp.pad(x_seq_nhwc, ((0, 0), (0, 0), (p, p), (p, p), (0, 0)))
    patches = jnp.concatenate(
        [xp[:, :, ki:ki + H, kj:kj + W, :]
         for ki in range(k) for kj in range(k)], axis=-1)       # (B,T,H,W,kkCin)
    patches = patches.reshape(B, T, H * W, k * k * Cin).astype(jnp.bfloat16)

    bias2d = bias.reshape(1, 4 * Ch).astype(jnp.float32)

    kernel = functools.partial(_convlstm_layer_kernel,
                               ksize=k, H=H, W=W, Ch=Ch)

    h_seq, c_fin = pl.pallas_call(
        kernel,
        out_shape=(jax.ShapeDtypeStruct((B, T, H * W, Ch), jnp.float32),
                   jax.ShapeDtypeStruct((B, H * W, Ch), jnp.float32)),
        grid_spec=pltpu.PrefetchScalarGridSpec(
            num_scalar_prefetch=0,
            grid=(B, T),
            in_specs=[
                pl.BlockSpec((1, 1, H * W, k * k * Cin),
                             lambda b, t: (b, t, 0, 0)),
                pl.BlockSpec((k * k * Cin, 4 * Ch), lambda b, t: (0, 0)),
                pl.BlockSpec((k * k * Ch, 4 * Ch), lambda b, t: (0, 0)),
                pl.BlockSpec((1, 4 * Ch), lambda b, t: (0, 0)),
            ],
            out_specs=(
                pl.BlockSpec((1, 1, H * W, Ch), lambda b, t: (b, t, 0, 0)),
                pl.BlockSpec((1, H * W, Ch), lambda b, t: (b, 0, 0)),
            ),
            scratch_shapes=[
                pltpu.VMEM((H + 2 * p, W + 2 * p, Ch), jnp.float32),  # padded h
                pltpu.VMEM((H * W, Ch), jnp.float32),                 # c
            ],
        ),
        compiler_params=pltpu.CompilerParams(
            dimension_semantics=("parallel", "arbitrary"),
            vmem_limit_bytes=32 * 1024 * 1024,
        ),
    )(patches, wx, wh, bias2d)

    h_seq = h_seq.reshape(B, T, H, W, Ch)
    c_fin = c_fin.reshape(B, H, W, Ch)
    return h_seq, (h_seq[:, -1], c_fin)


# ----------------------------------------------------------------------------
# Encoder (ConvLSTM stack): thin JAX glue around the per-layer fused kernel.
# ----------------------------------------------------------------------------
def init_encoder_params(key, channels, hidden_dims, kernel_sizes):
    """Deterministic init matching nn.Conv2d (OIHW) shapes; stored split+flat."""
    params = []
    cur_in = channels
    for hd, k in zip(hidden_dims, kernel_sizes):
        key, wk, bk = jax.random.split(key, 3)
        ctot = cur_in + hd
        w_oihw = 0.1 * jax.random.normal(wk, (4 * hd, ctot, k, k), jnp.float32)
        w_hwio = jnp.transpose(w_oihw, (2, 3, 1, 0))            # (k, k, ctot, 4hd)
        b = 0.1 * jax.random.normal(bk, (4 * hd,), jnp.float32)
        wx = w_hwio[:, :, :cur_in, :].reshape(k * k * cur_in, 4 * hd)
        wh = w_hwio[:, :, cur_in:, :].reshape(k * k * hd, 4 * hd)
        params.append({"w_hwio": w_hwio, "b": b,
                       "wx": wx.astype(jnp.bfloat16),
                       "wh": wh.astype(jnp.bfloat16),
                       "k": k, "hidden": hd, "cin": cur_in})
        cur_in = hd
    return params


def encoder_forward(x_btchw, params):
    """x_btchw: (B, T, C, H, W).  Returns (out[-1], hidden_list) like Encoder."""
    cur = jnp.transpose(x_btchw, (0, 1, 3, 4, 2))               # (B, T, H, W, C)
    hidden_list = []
    for prm in params:
        cur, (h_fin, c_fin) = convlstm_layer(
            cur, prm["wx"], prm["wh"], prm["b"],
            ksize=prm["k"], hidden_dim=prm["hidden"])
        hidden_list.append((jnp.transpose(h_fin, (0, 3, 1, 2)),  # back to NCHW
                            jnp.transpose(c_fin, (0, 3, 1, 2))))
    out_last = jnp.transpose(cur, (0, 1, 4, 2, 3))              # (B, T, Ch, H, W)
    return out_last, hidden_list


# ----------------------------------------------------------------------------
# Pure-JAX reference (f32, lax.conv) for a loose numerical sanity check.
# ----------------------------------------------------------------------------
def _encoder_reference(x_btchw, params):
    B, T, C, H, W = x_btchw.shape
    cur = jnp.transpose(x_btchw, (0, 1, 3, 4, 2))
    hidden = []
    for prm in params:
        k, Ch = prm["k"], prm["hidden"]
        w, b = prm["w_hwio"], prm["b"]
        h = jnp.zeros((B, H, W, Ch), jnp.float32)
        c = jnp.zeros((B, H, W, Ch), jnp.float32)
        ys = []
        for t in range(T):
            inp = jnp.concatenate([cur[:, t], h], axis=-1)
            gates = jax.lax.conv_general_dilated(
                inp, w, window_strides=(1, 1), padding="SAME",
                dimension_numbers=("NHWC", "HWIO", "NHWC")) + b
            i_g = jax.nn.sigmoid(gates[..., :Ch])
            f_g = jax.nn.sigmoid(gates[..., Ch:2 * Ch])
            o_g = jax.nn.sigmoid(gates[..., 2 * Ch:3 * Ch])
            g_g = jnp.tanh(gates[..., 3 * Ch:])
            c = f_g * c + i_g * g_g
            h = o_g * jnp.tanh(c)
            ys.append(h)
        cur = jnp.stack(ys, axis=1)
        hidden.append((h, c))
    return jnp.transpose(cur, (0, 1, 4, 2, 3)), hidden


if __name__ == "__main__":
    B, T, C, H, W = 2, 8, 4, 8, 8
    hidden_dims = [16, 32]         # args.hidden_dims (per layer)
    kernel_sizes = [3, 3]          # args.kernel_size
    # args.n_layers == len(hidden_dims); args.n_additional_convs == 0 (see TODO)

    key = jax.random.PRNGKey(0)
    key, xk = jax.random.split(key)
    x = jax.random.normal(xk, (B, T, C, H, W), jnp.float32)
    params = init_encoder_params(key, C, hidden_dims, kernel_sizes)

    run = jax.jit(lambda xin: encoder_forward(xin, params))
    out_last, hidden_list = run(x)
    out_last = jax.block_until_ready(out_last)
    for h, c in hidden_list:
        jax.block_until_ready(h)
        jax.block_until_ready(c)

    assert out_last.shape == (B, T, hidden_dims[-1], H, W)
    assert hidden_list[0][0].shape == (B, hidden_dims[0], H, W)
    assert hidden_list[1][1].shape == (B, hidden_dims[1], H, W)
    assert bool(jnp.all(jnp.isfinite(out_last)))

    # Loose sanity check vs f32 reference (kernel uses bf16 MXU operands).
    ref_out, _ = _encoder_reference(x, params)
    max_err = float(jnp.max(jnp.abs(out_last - ref_out)))
    assert max_err < 0.1, f"max abs error vs reference too large: {max_err}"

    print("KERNEL_OK")
</pallas_src>

<mosaic_0001>
module attributes {stable_mosaic.version = 11 : i64} {
  func.func @_convlstm_layer_kernel(%arg0: i32, %arg1: i32, %arg2: memref<1x1x64x36xbf16, #tpu.memory_space<vmem>>, %arg3: memref<36x64xbf16, #tpu.memory_space<vmem>>, %arg4: memref<144x64xbf16, #tpu.memory_space<vmem>>, %arg5: memref<1x64xf32, #tpu.memory_space<vmem>>, %arg6: memref<1x1x64x16xf32, #tpu.memory_space<vmem>>, %arg7: memref<1x64x16xf32, #tpu.memory_space<vmem>>, %arg8: memref<10x10x16xf32, #tpu.memory_space<vmem>>, %arg9: memref<64x16xf32, #tpu.memory_space<vmem>>) attributes {dimension_semantics = [#tpu.dimension_semantics<parallel>, #tpu.dimension_semantics<arbitrary>], iteration_bounds = array<i64: 2, 8>, scalar_prefetch = 0 : i64, scratch_operands = 2 : i64, tpu.core_type = #tpu.core_type<tc>, window_params = [{transform_indices = @transform_0, window_bounds = array<i64: 1, 1, 64, 36>}, {pipeline_mode = #tpu.pipeline_mode<synchronous>, transform_indices = @transform_1, window_bounds = array<i64: 36, 64>}, {pipeline_mode = #tpu.pipeline_mode<synchronous>, transform_indices = @transform_2, window_bounds = array<i64: 144, 64>}, {pipeline_mode = #tpu.pipeline_mode<synchronous>, transform_indices = @transform_3, window_bounds = array<i64: 1, 64>}, {transform_indices = @transform_4, window_bounds = array<i64: 1, 1, 64, 16>}, {transform_indices = @transform_5, window_bounds = array<i64: 1, 64, 16>}]} {
    %c0_i32 = arith.constant 0 : i32
    %0 = arith.cmpi eq, %arg1, %c0_i32 : i32
    %1 = arith.extui %0 : i1 to i32
    %c0_i32_0 = arith.constant 0 : i32
    %2 = arith.cmpi ne, %1, %c0_i32_0 : i32
    scf.if %2 {
      %cst_30 = arith.constant 0.000000e+00 : f32
      %59 = vector.broadcast %cst_30 : f32 to vector<10x10x16xf32>
      %c0_31 = arith.constant 0 : index
      %c0_32 = arith.constant 0 : index
      %c0_33 = arith.constant 0 : index
      %60 = vector.load %arg8[%c0_31, %c0_32, %c0_33] : memref<10x10x16xf32, #tpu.memory_space<vmem>>, vector<10x10x16xf32>
      tpu.vector_store %arg8[%c0_31, %c0_32, %c0_33], %59 {strides = array<i32>} : memref<10x10x16xf32, #tpu.memory_space<vmem>>, vector<10x10x16xf32>,
      %cst_34 = arith.constant 0.000000e+00 : f32
      %61 = vector.broadcast %cst_34 : f32 to vector<64x16xf32>
      %c0_35 = arith.constant 0 : index
      %c0_36 = arith.constant 0 : index
      %62 = vector.load %arg9[%c0_35, %c0_36] : memref<64x16xf32, #tpu.memory_space<vmem>>, vector<64x16xf32>
      tpu.vector_store %arg9[%c0_35, %c0_36], %61 {strides = array<i32>} : memref<64x16xf32, #tpu.memory_space<vmem>>, vector<64x16xf32>,
    } else {
    }
    %c0 = arith.constant 0 : index
    %c0_1 = arith.constant 0 : index
    %c0_2 = arith.constant 0 : index
    %c0_3 = arith.constant 0 : index
    %3 = vector.load %arg2[%c0, %c0_1, %c0_2, %c0_3] : memref<1x1x64x36xbf16, #tpu.memory_space<vmem>>, vector<1x1x64x36xbf16>
    %4 = vector.shape_cast %3 : vector<1x1x64x36xbf16> to vector<64x36xbf16>
    %c0_4 = arith.constant 0 : index
    %c0_5 = arith.constant 0 : index
    %5 = vector.load %arg3[%c0_4, %c0_5] : memref<36x64xbf16, #tpu.memory_space<vmem>>, vector<36x64xbf16>
    %cst = arith.constant dense<0.000000e+00> : vector<64x64xf32>
    %6 = tpu.matmul %4, %5, %cst {dimension_numbers = #tpu.dot_dimension_numbers<[1], [0], [0], [1], [0, 0, 1, 1], [], []>} : vector<64x36xbf16>, vector<36x64xbf16>, vector<64x64xf32> -> vector<64x64xf32>
    %c0_6 = arith.constant 0 : index
    %c0_7 = arith.constant 0 : index
    %c0_8 = arith.constant 0 : index
    %7 = vector.load %arg8[%c0_6, %c0_7, %c0_8] : memref<10x10x16xf32, #tpu.memory_space<vmem>>, vector<10x10x16xf32>
    %8 = arith.truncf %7 : vector<10x10x16xf32> to vector<10x10x16xbf16>
    %9 = vector.extract_strided_slice %8 {offsets = [0, 0, 0], sizes = [8, 8, 16], strides = [1, 1, 1]} : vector<10x10x16xbf16> to vector<8x8x16xbf16>
    %10 = vector.extract_strided_slice %8 {offsets = [0, 1, 0], sizes = [8, 8, 16], strides = [1, 1, 1]} : vector<10x10x16xbf16> to vector<8x8x16xbf16>
    %11 = vector.extract_strided_slice %8 {offsets = [0, 2, 0], sizes = [8, 8, 16], strides = [1, 1, 1]} : vector<10x10x16xbf16> to vector<8x8x16xbf16>
    %12 = vector.extract_strided_slice %8 {offsets = [1, 0, 0], sizes = [8, 8, 16], strides = [1, 1, 1]} : vector<10x10x16xbf16> to vector<8x8x16xbf16>
    %13 = vector.extract_strided_slice %8 {offsets = [1, 1, 0], sizes = [8, 8, 16], strides = [1, 1, 1]} : vector<10x10x16xbf16> to vector<8x8x16xbf16>
    %14 = vector.extract_strided_slice %8 {offsets = [1, 2, 0], sizes = [8, 8, 16], strides = [1, 1, 1]} : vector<10x10x16xbf16> to vector<8x8x16xbf16>
    %15 = vector.extract_strided_slice %8 {offsets = [2, 0, 0], sizes = [8, 8, 16], strides = [1, 1, 1]} : vector<10x10x16xbf16> to vector<8x8x16xbf16>
    %16 = vector.extract_strided_slice %8 {offsets = [2, 1, 0], sizes = [8, 8, 16], strides = [1, 1, 1]} : vector<10x10x16xbf16> to vector<8x8x16xbf16>
    %17 = vector.extract_strided_slice %8 {offsets = [2, 2, 0], sizes = [8, 8, 16], strides = [1, 1, 1]} : vector<10x10x16xbf16> to vector<8x8x16xbf16>
    %18 = tpu.concatenate %9, %10, %11, %12, %13, %14, %15, %16, %17 in 2 : vector<8x8x16xbf16>, vector<8x8x16xbf16>, vector<8x8x16xbf16>, vector<8x8x16xbf16>, vector<8x8x16xbf16>, vector<8x8x16xbf16>, vector<8x8x16xbf16>, vector<8x8x16xbf16>, vector<8x8x16xbf16> -> vector<8x8x144xbf16>
    %19 = vector.shape_cast %18 : vector<8x8x144xbf16> to vector<64x144xbf16>
    %c0_9 = arith.constant 0 : index
    %c0_10 = arith.constant 0 : index
    %20 = vector.load %arg4[%c0_9, %c0_10] : memref<144x64xbf16, #tpu.memory_space<vmem>>, vector<144x64xbf16>
    %cst_11 = arith.constant dense<0.000000e+00> : vector<64x64xf32>
    %21 = tpu.matmul %19, %20, %cst_11 {dimension_numbers = #tpu.dot_dimension_numbers<[1], [0], [0], [1], [0, 0, 1, 1], [], []>} : vector<64x144xbf16>, vector<144x64xbf16>, vector<64x64xf32> -> vector<64x64xf32>
    %22 = arith.addf %6, %21 : vector<64x64xf32>
    %c0_12 = arith.constant 0 : index
    %c0_13 = arith.constant 0 : index
    %23 = vector.load %arg5[%c0_12, %c0_13] : memref<1x64xf32, #tpu.memory_space<vmem>>, vector<1x64xf32>
    %24 = vector.broadcast %23 : vector<1x64xf32> to vector<64x64xf32>
    %25 = arith.addf %22, %24 : vector<64x64xf32>
    %26 = vector.extract_strided_slice %25 {offsets = [0, 0], sizes = [64, 16], strides = [1, 1]} : vector<64x64xf32> to vector<64x16xf32>
    %27 = arith.negf %26 : vector<64x16xf32>
    %28 = math.exp %27 : vector<64x16xf32>
    %cst_14 = arith.constant 1.000000e+00 : f32
    %29 = vector.broadcast %cst_14 : f32 to vector<64x16xf32>
    %30 = arith.addf %29, %28 : vector<64x16xf32>
    %31 = arith.divf %29, %30 : vector<64x16xf32>
    %32 = vector.extract_strided_slice %25 {offsets = [0, 16], sizes = [64, 16], strides = [1, 1]} : vector<64x64xf32> to vector<64x16xf32>
    %33 = arith.negf %32 : vector<64x16xf32>
    %34 = math.exp %33 : vector<64x16xf32>
    %cst_15 = arith.constant 1.000000e+00 : f32
    %35 = vector.broadcast %cst_15 : f32 to vector<64x16xf32>
    %36 = arith.addf %35, %34 : vector<64x16xf32>
    %37 = arith.divf %35, %36 : vector<64x16xf32>
    %38 = vector.extract_strided_slice %25 {offsets = [0, 32], sizes = [64, 16], strides = [1, 1]} : vector<64x64xf32> to vector<64x16xf32>
    %39 = arith.negf %38 : vector<64x16xf32>
    %40 = math.exp %39 : vector<64x16xf32>
    %cst_16 = arith.constant 1.000000e+00 : f32
    %41 = vector.broadcast %cst_16 : f32 to vector<64x16xf32>
    %42 = arith.addf %41, %40 : vector<64x16xf32>
    %43 = arith.divf %41, %42 : vector<64x16xf32>
    %44 = vector.extract_strided_slice %25 {offsets = [0, 48], sizes = [64, 16], strides = [1, 1]} : vector<64x64xf32> to vector<64x16xf32>
    %45 = math.tanh %44 : vector<64x16xf32>
    %c0_17 = arith.constant 0 : index
    %c0_18 = arith.constant 0 : index
    %46 = vector.load %arg9[%c0_17, %c0_18] : memref<64x16xf32, #tpu.memory_space<vmem>>, vector<64x16xf32>
    %47 = arith.mulf %37, %46 : vector<64x16xf32>
    %48 = arith.mulf %31, %45 : vector<64x16xf32>
    %49 = arith.addf %47, %48 : vector<64x16xf32>
    %50 = math.tanh %49 : vector<64x16xf32>
    %51 = arith.mulf %43, %50 : vector<64x16xf32>
    %c0_19 = arith.constant 0 : index
    %c0_20 = arith.constant 0 : index
    %52 = vector.load %arg9[%c0_19, %c0_20] : memref<64x16xf32, #tpu.memory_space<vmem>>, vector<64x16xf32>
    tpu.vector_store %arg9[%c0_19, %c0_20], %49 {strides = array<i32>} : memref<64x16xf32, #tpu.memory_space<vmem>>, vector<64x16xf32>,
    %53 = vector.shape_cast %51 : vector<64x16xf32> to vector<8x8x16xf32>
    %c1 = arith.constant 1 : index
    %c1_21 = arith.constant 1 : index
    %c0_22 = arith.constant 0 : index
    %54 = vector.load %arg8[%c1, %c1_21, %c0_22] : memref<10x10x16xf32, #tpu.memory_space<vmem>>, vector<8x8x16xf32>
    tpu.vector_store %arg8[%c1, %c1_21, %c0_22], %53 {strides = array<i32>} : memref<10x10x16xf32, #tpu.memory_space<vmem>>, vector<8x8x16xf32>,
    %55 = vector.shape_cast %51 : vector<64x16xf32> to vector<1x1x64x16xf32>
    %c0_23 = arith.constant 0 : index
    %c0_24 = arith.constant 0 : index
    %c0_25 = arith.constant 0 : index
    %c0_26 = arith.constant 0 : index
    %56 = vector.load %arg6[%c0_23, %c0_24, %c0_25, %c0_26] : memref<1x1x64x16xf32, #tpu.memory_space<vmem>>, vector<1x1x64x16xf32>
    tpu.vector_store %arg6[%c0_23, %c0_24, %c0_25, %c0_26], %55 {strides = array<i32>} : memref<1x1x64x16xf32, #tpu.memory_space<vmem>>, vector<1x1x64x16xf32>,
    %57 = vector.shape_cast %49 : vector<64x16xf32> to vector<1x64x16xf32>
    %c0_27 = arith.constant 0 : index
    %c0_28 = arith.constant 0 : index
    %c0_29 = arith.constant 0 : index
    %58 = vector.load %arg7[%c0_27, %c0_28, %c0_29] : memref<1x64x16xf32, #tpu.memory_space<vmem>>, vector<1x64x16xf32>
    tpu.vector_store %arg7[%c0_27, %c0_28, %c0_29], %57 {strides = array<i32>} : memref<1x64x16xf32, #tpu.memory_space<vmem>>, vector<1x64x16xf32>,
    return
  }
  func.func @transform_0(%arg0: i32, %arg1: i32) -> (i32, i32, i32, i32) {
    %c0_i32 = arith.constant 0 : i32
    %c0_i32_0 = arith.constant 0 : i32
    %c0_i32_1 = arith.constant 0 : i32
    return %arg0, %arg1, %c0_i32, %c0_i32_0 : i32, i32, i32, i32
  }
  func.func @transform_1(%arg0: i32, %arg1: i32) -> (i32, i32) {
    %c0_i32 = arith.constant 0 : i32
    %c0_i32_0 = arith.constant 0 : i32
    %c0_i32_1 = arith.constant 0 : i32
    return %c0_i32, %c0_i32_0 : i32, i32
  }
  func.func @transform_2(%arg0: i32, %arg1: i32) -> (i32, i32) {
    %c0_i32 = arith.constant 0 : i32
    %c0_i32_0 = arith.constant 0 : i32
    %c0_i32_1 = arith.constant 0 : i32
    return %c0_i32, %c0_i32_0 : i32, i32
  }
  func.func @transform_3(%arg0: i32, %arg1: i32) -> (i32, i32) {
    %c0_i32 = arith.constant 0 : i32
    %c0_i32_0 = arith.constant 0 : i32
    %c0_i32_1 = arith.constant 0 : i32
    return %c0_i32, %c0_i32_0 : i32, i32
  }
  func.func @transform_4(%arg0: i32, %arg1: i32) -> (i32, i32, i32, i32) {
    %c0_i32 = arith.constant 0 : i32
    %c0_i32_0 = arith.constant 0 : i32
    %c0_i32_1 = arith.constant 0 : i32
    return %arg0, %arg1, %c0_i32, %c0_i32_0 : i32, i32, i32, i32
  }
  func.func @transform_5(%arg0: i32, %arg1: i32) -> (i32, i32, i32) {
    %c0_i32 = arith.constant 0 : i32
    %c0_i32_0 = arith.constant 0 : i32
    %c0_i32_1 = arith.constant 0 : i32
    return %arg0, %c0_i32, %c0_i32_0 : i32, i32, i32
  }
}

module attributes {stable_mosaic.version = 11 : i64} {
  func.func @_convlstm_layer_kernel(%arg0: i32, %arg1: i32, %arg2: memref<1x1x64x144xbf16, #tpu.memory_space<vmem>>, %arg3: memref<144x128xbf16, #tpu.memory_space<vmem>>, %arg4: memref<288x128xbf16, #tpu.memory_space<vmem>>, %arg5: memref<1x128xf32, #tpu.memory_space<vmem>>, %arg6: memref<1x1x64x32xf32, #tpu.memory_space<vmem>>, %arg7: memref<1x64x32xf32, #tpu.memory_space<vmem>>, %arg8: memref<10x10x32xf32, #tpu.memory_space<vmem>>, %arg9: memref<64x32xf32, #tpu.memory_space<vmem>>) attributes {dimension_semantics = [#tpu.dimension_semantics<parallel>, #tpu.dimension_semantics<arbitrary>], iteration_bounds = array<i64: 2, 8>, scalar_prefetch = 0 : i64, scratch_operands = 2 : i64, tpu.core_type = #tpu.core_type<tc>, window_params = [{transform_indices = @transform_0, window_bounds = array<i64: 1, 1, 64, 144>}, {pipeline_mode = #tpu.pipeline_mode<synchronous>, transform_indices = @transform_1, window_bounds = array<i64: 144, 128>}, {pipeline_mode = #tpu.pipeline_mode<synchronous>, transform_indices = @transform_2, window_bounds = array<i64: 288, 128>}, {pipeline_mode = #tpu.pipeline_mode<synchronous>, transform_indices = @transform_3, window_bounds = array<i64: 1, 128>}, {transform_indices = @transform_4, window_bounds = array<i64: 1, 1, 64, 32>}, {transform_indices = @transform_5, window_bounds = array<i64: 1, 64, 32>}]} {
    %c0_i32 = arith.constant 0 : i32
    %0 = arith.cmpi eq, %arg1, %c0_i32 : i32
    %1 = arith.extui %0 : i1 to i32
    %c0_i32_0 = arith.constant 0 : i32
    %2 = arith.cmpi ne, %1, %c0_i32_0 : i32
    scf.if %2 {
      %cst_30 = arith.constant 0.000000e+00 : f32
      %59 = vector.broadcast %cst_30 : f32 to vector<10x10x32xf32>
      %c0_31 = arith.constant 0 : index
      %c0_32 = arith.constant 0 : index
      %c0_33 = arith.constant 0 : index
      %60 = vector.load %arg8[%c0_31, %c0_32, %c0_33] : memref<10x10x32xf32, #tpu.memory_space<vmem>>, vector<10x10x32xf32>
      tpu.vector_store %arg8[%c0_31, %c0_32, %c0_33], %59 {strides = array<i32>} : memref<10x10x32xf32, #tpu.memory_space<vmem>>, vector<10x10x32xf32>,
      %cst_34 = arith.constant 0.000000e+00 : f32
      %61 = vector.broadcast %cst_34 : f32 to vector<64x32xf32>
      %c0_35 = arith.constant 0 : index
      %c0_36 = arith.constant 0 : index
      %62 = vector.load %arg9[%c0_35, %c0_36] : memref<64x32xf32, #tpu.memory_space<vmem>>, vector<64x32xf32>
      tpu.vector_store %arg9[%c0_35, %c0_36], %61 {strides = array<i32>} : memref<64x32xf32, #tpu.memory_space<vmem>>, vector<64x32xf32>,
    } else {
    }
    %c0 = arith.constant 0 : index
    %c0_1 = arith.constant 0 : index
    %c0_2 = arith.constant 0 : index
    %c0_3 = arith.constant 0 : index
    %3 = vector.load %arg2[%c0, %c0_1, %c0_2, %c0_3] : memref<1x1x64x144xbf16, #tpu.memory_space<vmem>>, vector<1x1x64x144xbf16>
    %4 = vector.shape_cast %3 : vector<1x1x64x144xbf16> to vector<64x144xbf16>
    %c0_4 = arith.constant 0 : index
    %c0_5 = arith.constant 0 : index
    %5 = vector.load %arg3[%c0_4, %c0_5] : memref<144x128xbf16, #tpu.memory_space<vmem>>, vector<144x128xbf16>
    %cst = arith.constant dense<0.000000e+00> : vector<64x128xf32>
    %6 = tpu.matmul %4, %5, %cst {dimension_numbers = #tpu.dot_dimension_numbers<[1], [0], [0], [1], [0, 0, 1, 1], [], []>} : vector<64x144xbf16>, vector<144x128xbf16>, vector<64x128xf32> -> vector<64x128xf32>
    %c0_6 = arith.constant 0 : index
    %c0_7 = arith.constant 0 : index
    %c0_8 = arith.constant 0 : index
    %7 = vector.load %arg8[%c0_6, %c0_7, %c0_8] : memref<10x10x32xf32, #tpu.memory_space<vmem>>, vector<10x10x32xf32>
    %8 = arith.truncf %7 : vector<10x10x32xf32> to vector<10x10x32xbf16>
    %9 = vector.extract_strided_slice %8 {offsets = [0, 0, 0], sizes = [8, 8, 32], strides = [1, 1, 1]} : vector<10x10x32xbf16> to vector<8x8x32xbf16>
    %10 = vector.extract_strided_slice %8 {offsets = [0, 1, 0], sizes = [8, 8, 32], strides = [1, 1, 1]} : vector<10x10x32xbf16> to vector<8x8x32xbf16>
    %11 = vector.extract_strided_slice %8 {offsets = [0, 2, 0], sizes = [8, 8, 32], strides = [1, 1, 1]} : vector<10x10x32xbf16> to vector<8x8x32xbf16>
    %12 = vector.extract_strided_slice %8 {offsets = [1, 0, 0], sizes = [8, 8, 32], strides = [1, 1, 1]} : vector<10x10x32xbf16> to vector<8x8x32xbf16>
    %13 = vector.extract_strided_slice %8 {offsets = [1, 1, 0], sizes = [8, 8, 32], strides = [1, 1, 1]} : vector<10x10x32xbf16> to vector<8x8x32xbf16>
    %14 = vector.extract_strided_slice %8 {offsets = [1, 2, 0], sizes = [8, 8, 32], strides = [1, 1, 1]} : vector<10x10x32xbf16> to vector<8x8x32xbf16>
    %15 = vector.extract_strided_slice %8 {offsets = [2, 0, 0], sizes = [8, 8, 32], strides = [1, 1, 1]} : vector<10x10x32xbf16> to vector<8x8x32xbf16>
    %16 = vector.extract_strided_slice %8 {offsets = [2, 1, 0], sizes = [8, 8, 32], strides = [1, 1, 1]} : vector<10x10x32xbf16> to vector<8x8x32xbf16>
    %17 = vector.extract_strided_slice %8 {offsets = [2, 2, 0], sizes = [8, 8, 32], strides = [1, 1, 1]} : vector<10x10x32xbf16> to vector<8x8x32xbf16>
    %18 = tpu.concatenate %9, %10, %11, %12, %13, %14, %15, %16, %17 in 2 : vector<8x8x32xbf16>, vector<8x8x32xbf16>, vector<8x8x32xbf16>, vector<8x8x32xbf16>, vector<8x8x32xbf16>, vector<8x8x32xbf16>, vector<8x8x32xbf16>, vector<8x8x32xbf16>, vector<8x8x32xbf16> -> vector<8x8x288xbf16>
    %19 = vector.shape_cast %18 : vector<8x8x288xbf16> to vector<64x288xbf16>
    %c0_9 = arith.constant 0 : index
    %c0_10 = arith.constant 0 : index
    %20 = vector.load %arg4[%c0_9, %c0_10] : memref<288x128xbf16, #tpu.memory_space<vmem>>, vector<288x128xbf16>
    %cst_11 = arith.constant dense<0.000000e+00> : vector<64x128xf32>
    %21 = tpu.matmul %19, %20, %cst_11 {dimension_numbers = #tpu.dot_dimension_numbers<[1], [0], [0], [1], [0, 0, 1, 1], [], []>} : vector<64x288xbf16>, vector<288x128xbf16>, vector<64x128xf32> -> vector<64x128xf32>
    %22 = arith.addf %6, %21 : vector<64x128xf32>
    %c0_12 = arith.constant 0 : index
    %c0_13 = arith.constant 0 : index
    %23 = vector.load %arg5[%c0_12, %c0_13] : memref<1x128xf32, #tpu.memory_space<vmem>>, vector<1x128xf32>
    %24 = vector.broadcast %23 : vector<1x128xf32> to vector<64x128xf32>
    %25 = arith.addf %22, %24 : vector<64x128xf32>
    %26 = vector.extract_strided_slice %25 {offsets = [0, 0], sizes = [64, 32], strides = [1, 1]} : vector<64x128xf32> to vector<64x32xf32>
    %27 = arith.negf %26 : vector<64x32xf32>
    %28 = math.exp %27 : vector<64x32xf32>
    %cst_14 = arith.constant 1.000000e+00 : f32
    %29 = vector.broadcast %cst_14 : f32 to vector<64x32xf32>
    %30 = arith.addf %29, %28 : vector<64x32xf32>
    %31 = arith.divf %29, %30 : vector<64x32xf32>
    %32 = vector.extract_strided_slice %25 {offsets = [0, 32], sizes = [64, 32], strides = [1, 1]} : vector<64x128xf32> to vector<64x32xf32>
    %33 = arith.negf %32 : vector<64x32xf32>
    %34 = math.exp %33 : vector<64x32xf32>
    %cst_15 = arith.constant 1.000000e+00 : f32
    %35 = vector.broadcast %cst_15 : f32 to vector<64x32xf32>
    %36 = arith.addf %35, %34 : vector<64x32xf32>
    %37 = arith.divf %35, %36 : vector<64x32xf32>
    %38 = vector.extract_strided_slice %25 {offsets = [0, 64], sizes = [64, 32], strides = [1, 1]} : vector<64x128xf32> to vector<64x32xf32>
    %39 = arith.negf %38 : vector<64x32xf32>
    %40 = math.exp %39 : vector<64x32xf32>
    %cst_16 = arith.constant 1.000000e+00 : f32
    %41 = vector.broadcast %cst_16 : f32 to vector<64x32xf32>
    %42 = arith.addf %41, %40 : vector<64x32xf32>
    %43 = arith.divf %41, %42 : vector<64x32xf32>
    %44 = vector.extract_strided_slice %25 {offsets = [0, 96], sizes = [64, 32], strides = [1, 1]} : vector<64x128xf32> to vector<64x32xf32>
    %45 = math.tanh %44 : vector<64x32xf32>
    %c0_17 = arith.constant 0 : index
    %c0_18 = arith.constant 0 : index
    %46 = vector.load %arg9[%c0_17, %c0_18] : memref<64x32xf32, #tpu.memory_space<vmem>>, vector<64x32xf32>
    %47 = arith.mulf %37, %46 : vector<64x32xf32>
    %48 = arith.mulf %31, %45 : vector<64x32xf32>
    %49 = arith.addf %47, %48 : vector<64x32xf32>
    %50 = math.tanh %49 : vector<64x32xf32>
    %51 = arith.mulf %43, %50 : vector<64x32xf32>
    %c0_19 = arith.constant 0 : index
    %c0_20 = arith.constant 0 : index
    %52 = vector.load %arg9[%c0_19, %c0_20] : memref<64x32xf32, #tpu.memory_space<vmem>>, vector<64x32xf32>
    tpu.vector_store %arg9[%c0_19, %c0_20], %49 {strides = array<i32>} : memref<64x32xf32, #tpu.memory_space<vmem>>, vector<64x32xf32>,
    %53 = vector.shape_cast %51 : vector<64x32xf32> to vector<8x8x32xf32>
    %c1 = arith.constant 1 : index
    %c1_21 = arith.constant 1 : index
    %c0_22 = arith.constant 0 : index
    %54 = vector.load %arg8[%c1, %c1_21, %c0_22] : memref<10x10x32xf32, #tpu.memory_space<vmem>>, vector<8x8x32xf32>
    tpu.vector_store %arg8[%c1, %c1_21, %c0_22], %53 {strides = array<i32>} : memref<10x10x32xf32, #tpu.memory_space<vmem>>, vector<8x8x32xf32>,
    %55 = vector.shape_cast %51 : vector<64x32xf32> to vector<1x1x64x32xf32>
    %c0_23 = arith.constant 0 : index
    %c0_24 = arith.constant 0 : index
    %c0_25 = arith.constant 0 : index
    %c0_26 = arith.constant 0 : index
    %56 = vector.load %arg6[%c0_23, %c0_24, %c0_25, %c0_26] : memref<1x1x64x32xf32, #tpu.memory_space<vmem>>, vector<1x1x64x32xf32>
    tpu.vector_store %arg6[%c0_23, %c0_24, %c0_25, %c0_26], %55 {strides = array<i32>} : memref<1x1x64x32xf32, #tpu.memory_space<vmem>>, vector<1x1x64x32xf32>,
    %57 = vector.shape_cast %49 : vector<64x32xf32> to vector<1x64x32xf32>
    %c0_27 = arith.constant 0 : index
    %c0_28 = arith.constant 0 : index
    %c0_29 = arith.constant 0 : index
    %58 = vector.load %arg7[%c0_27, %c0_28, %c0_29] : memref<1x64x32xf32, #tpu.memory_space<vmem>>, vector<1x64x32xf32>
    tpu.vector_store %arg7[%c0_27, %c0_28, %c0_29], %57 {strides = array<i32>} : memref<1x64x32xf32, #tpu.memory_space<vmem>>, vector<1x64x32xf32>,
    return
  }
  func.func @transform_0(%arg0: i32, %arg1: i32) -> (i32, i32, i32, i32) {
    %c0_i32 = arith.constant 0 : i32
    %c0_i32_0 = arith.constant 0 : i32
    %c0_i32_1 = arith.constant 0 : i32
    return %arg0, %arg1, %c0_i32, %c0_i32_0 : i32, i32, i32, i32
  }
  func.func @transform_1(%arg0: i32, %arg1: i32) -> (i32, i32) {
    %c0_i32 = arith.constant 0 : i32
    %c0_i32_0 = arith.constant 0 : i32
    %c0_i32_1 = arith.constant 0 : i32
    return %c0_i32, %c0_i32_0 : i32, i32
  }
  func.func @transform_2(%arg0: i32, %arg1: i32) -> (i32, i32) {
    %c0_i32 = arith.constant 0 : i32
    %c0_i32_0 = arith.constant 0 : i32
    %c0_i32_1 = arith.constant 0 : i32
    return %c0_i32, %c0_i32_0 : i32, i32
  }
  func.func @transform_3(%arg0: i32, %arg1: i32) -> (i32, i32) {
    %c0_i32 = arith.constant 0 : i32
    %c0_i32_0 = arith.constant 0 : i32
    %c0_i32_1 = arith.constant 0 : i32
    return %c0_i32, %c0_i32_0 : i32, i32
  }
  func.func @transform_4(%arg0: i32, %arg1: i32) -> (i32, i32, i32, i32) {
    %c0_i32 = arith.constant 0 : i32
    %c0_i32_0 = arith.constant 0 : i32
    %c0_i32_1 = arith.constant 0 : i32
    return %arg0, %arg1, %c0_i32, %c0_i32_0 : i32, i32, i32, i32
  }
  func.func @transform_5(%arg0: i32, %arg1: i32) -> (i32, i32, i32) {
    %c0_i32 = arith.constant 0 : i32
    %c0_i32_0 = arith.constant 0 : i32
    %c0_i32_1 = arith.constant 0 : i32
    return %arg0, %c0_i32, %c0_i32_0 : i32, i32, i32
  }
}

</mosaic_0001>

<bundles_post_ra>
// kernel: _lambda_.2
= control target key start
LH: loop header
LB: loop body
LE: loop exit
PB: predicated region body
PF: predicated region fallthrough
CT: control target
= control target key end

     0   :  { %11 = vsyncpa [#allocation5], 0  ;;  %s2465_s0 = inlined_call_operand.vmem [shape: bf16[2,8,64,36], index: 0, kind: input, shape index: {}]   ;;  %s2466_s1 = inlined_call_operand.vmem [shape: bf16[36,64], index: 1, kind: input, shape index: {}]   ;;  %s2467_s2 = inlined_call_operand.vmem [shape: bf16[144,64], index: 2, kind: input, shape index: {}]   ;;  %s2468_s3 = inlined_call_operand.vmem [shape: f32[1,64], index: 3, kind: input, shape index: {}]   ;;  %s2469_s4 = inlined_call_operand.vmem [shape: f32[2,8,64,16], index: 4, kind: output, shape index: {0}]   ;;  %s2470_s5 = inlined_call_operand.hbm [shape: f32[2,64,16], index: 5, kind: output, shape index: {1}]  }
   0x1   :  { %13 = vsyncpa [#allocation5 + $0x1], 0  ;;  %s1848_s18 = smov 0   ;;  %s1850_s19 = smov 0  }
   0x2   :  { %s1852_s20 = smov 0   ;;  %s1854_s21 = smov 0  }
   0x3   :  { %s1856_s22 = smov 0   ;;  %s1858_s23 = smov 0  }
   0x4   :  { %s1860_s24 = smov 0   ;;  %s1862_s25 = smov 0  }
   0x5 LB: > { %2474 = sst [smem:[#allocation7_spill]] %s1796_s23  ;;  %s1466_s26 = sadd.s32 4294967295, %s1804_s25   ;;  %s1804_s25 = sphi %s1862_s25, %s19_s25   ;;  %s1800_s24 = sphi %s1860_s24, %s2483_s24   ;;  %s1796_s23 = sphi %s1858_s23, %s2482_s23   ;;  %s1792_s22 = sphi %s1856_s22, %s2481_s22   ;;  %s1788_s21 = sphi %s1854_s21, %s2480_s21   ;;  %s1784_s20 = sphi %s1852_s20, %s2486_s20   ;;  %s1780_s19 = sphi %s1850_s19, %s2485_s19   ;;  %s1776_s18 = sphi %s1848_s18, %s2484_s18  }
   0x6   : > { %2475 = sst [smem:[#allocation8_spill]] %s1800_s24  ;;  %s1467_s27 = sadd.s32 4294967294, %s1804_s25  }
   0x7   : > { %s28_s28 = sadd.s32 1, %s1796_s23  ;;  %s31_s29 = sadd.s32 1, %s1800_s24 }
   0x8   : > { %p29_p0 = scmp.ge.s32.totalorder %s28_s28, 8  ;;  %p167_p1 = scmp.ne.s32.totalorder %s1784_s20, %s1780_s19 }
   0x9   : > { %p168_p2 = scmp.eq.s32.totalorder %s1466_s26, 15  ;;  %p173_p4 = scmp.ne.s32.totalorder %s1780_s19, %s1776_s18 }
   0xa   : > { %s2488_s28 = smov (%p29_p0, %s28_s28), 0  ;;  %s2490_s29 = smov (!%p29_p0, %s31_s29), %s1800_s24 }
   0xb   : > { %2476 = sst [smem:[#allocation9_spill]] %s2488_s28  ;;  %p1897_p3 = por %p168_p2, %p167_p1 }
   0xc   : > { %p33_p5 = scmp.ge.s32.totalorder %s2490_s29, 2  ;;  %p174_p6 = scmp.eq.s32.totalorder %s1467_s27, 15 }
   0xd   : > { %p1470_p7 = scmp.ge.s32.totalorder %s1804_s25, 1  ;;  %p213_p8 = scmp.lt.s32.totalorder %s1804_s25, 17 }
   0xe   : > { %s2492_s29 = smov (%p33_p5, %s2490_s29), 0  ;;  %p1907_p9 = por %p174_p6, %p173_p4 }
   0xf   : > { %2478 = sst [smem:[#allocation10_spill]] %s2492_s29  ;;  %p214_p10 = pnand %p1470_p7, %p213_p8 }
  0x10   : > { %s154_s7 = ssub.s32 %s1800_s24, %s2492_s29  ;;  %s157_s8 = sadd.s32 1, %s1784_s20 }
  0x11   : > { %p155_p11 = scmp.eq.s32.totalorder %s154_s7, 0  ;;  %217 = sbr.rel (%p214_p10) target bundleno = 981 (0x3d5), region = 36 }
  0x12   : > { %s251_s10 = sand.u32 (!%p214_p10), 1, %s1780_s19   ;;  %p254_p12 = scmp.lt.s32.totalorder (!%p214_p10), %s1792_s22, 1 }
  0x13   : > { %s1915_s9 = scalar_select %p155_p11, %s1784_s20, %s157_s8  }
  0x14   : > { %s1471_s11 = sshll.u32 (!%p214_p10), %s251_s10, 6  ;;  %p256_p13 = scmp.lt.s32.totalorder (!%p214_p10), %s1788_s21, 7 }
  0x15   : > { %s1934_s23 = scalar_lea.vmem (!%p214_p10), [#allocation4], %s1471_s11  ;;  %p1478_p0 = scmp.ne.s32.totalorder (!%p214_p10), %s1788_s21, 0 }
  0x18   : > { %s255_s12 = scalar_select %p254_p12, %s1792_s22, 1 }
  0x19   : > { %s257_s13 = scalar_select %p256_p13, %s1788_s21, 7 }
  0x1a   : > { %s1473_s14 = sshll.u32 %s255_s12, 6  ;;  %276 = sbr.rel (%p1478_p0) target bundleno = 41 (0x29), region = 40  ;;  %vm277_vm0 = vcmask (!%p1478_p0), 130048   ;;  %vm279_vm1 = vcmask (!%p1478_p0), 123904   ;;  %v1806_v0 = vmov (!%p1478_p0), 0.0  }
  0x1b   : > { %s1472_s15 = sshll.u32 %s257_s13, 3  ;;  %278 = vst.msk [vmem:[#allocation2] sm:$0xff] (!%p1478_p0), %vm277_vm0, %v1806_v0  ;;  %281 = vst.msk [vmem:[#allocation2 + $0x10] sm:$0xff] (!%p1478_p0), %vm277_vm0, %v1806_v0 }
  0x1c   : > { %s260_s16 = sadd.s32 %s1473_s14, %s1472_s15  ;;  %283 = vst.msk [vmem:[#allocation2 + $0x20] sm:$0xff] (!%p1478_p0), %vm277_vm0, %v1806_v0  ;;  %285 = vst.msk [vmem:[#allocation2 + $0x30] sm:$0xff] (!%p1478_p0), %vm277_vm0, %v1806_v0 }
  0x1d   : > { %s1474_s17 = sshll.u32 %s260_s16, 2  ;;  %s1477_s26 = sshll.u32 %s260_s16, 3  ;;  %287 = vst.msk [vmem:[#allocation2 + $0x40] sm:$0xff] (!%p1478_p0), %vm277_vm0, %v1806_v0  ;;  %289 = vst.msk [vmem:[#allocation2 + $0x50] sm:$0xff] (!%p1478_p0), %vm277_vm0, %v1806_v0 }
  0x1e   : > { %s1927_s8 = scalar_lea.vmem %s2465_s0, %s1474_s17  ;;  %s1932_s24 = scalar_lea.vmem %s2469_s4, %s1477_s26  ;;  %291 = vst.msk [vmem:[#allocation2 + $0x60] sm:$0xff] (!%p1478_p0), %vm277_vm0, %v1806_v0  ;;  %293 = vst.msk [vmem:[#allocation2 + $0x70] sm:$0xff] (!%p1478_p0), %vm277_vm0, %v1806_v0 }
  0x1f   : > { %295 = vst.msk [vmem:[#allocation2 + $0x80] sm:$0xff] (!%p1478_p0), %vm277_vm0, %v1806_v0  ;;  %297 = vst.msk [vmem:[#allocation2 + $0x90] sm:$0xff] (!%p1478_p0), %vm277_vm0, %v1806_v0 }
  0x20   : > { %299 = vst.msk [vmem:[#allocation3] sm:$0xff] (!%p1478_p0), %vm277_vm0, %v1806_v0  ;;  %300 = vst.msk [vmem:[#allocation3 + $0x8] sm:$0xff] (!%p1478_p0), %vm277_vm0, %v1806_v0 }
  0x21   : > { %301 = vst.msk [vmem:[#allocation3 + $0x10] sm:$0xff] %vm277_vm0, %v1806_v0  ;;  %302 = vst.msk [vmem:[#allocation3 + $0x18] sm:$0xff] %vm277_vm0, %v1806_v0 }
  0x22   : > { %303 = vst.msk [vmem:[#allocation3 + $0x20] sm:$0xff] %vm277_vm0, %v1806_v0  ;;  %304 = vst.msk [vmem:[#allocation3 + $0x28] sm:$0xff] %vm277_vm0, %v1806_v0 }
  0x23   : > { %305 = vst.msk [vmem:[#allocation3 + $0x30] sm:$0xff] %vm277_vm0, %v1806_v0  ;;  %306 = vst.msk [vmem:[#allocation3 + $0x38] sm:$0xff] %vm277_vm0, %v1806_v0 }
  0x24   : > { %280 = vst.msk [vmem:[#allocation2 + $0x8] sm:$0x3] %vm279_vm1, %v1806_v0  ;;  %282 = vst.msk [vmem:[#allocation2 + $0x18] sm:$0x3] %vm279_vm1, %v1806_v0 }
  0x25   : > { %284 = vst.msk [vmem:[#allocation2 + $0x28] sm:$0x3] %vm279_vm1, %v1806_v0  ;;  %286 = vst.msk [vmem:[#allocation2 + $0x38] sm:$0x3] %vm279_vm1, %v1806_v0 }
  0x26   : > { %288 = vst.msk [vmem:[#allocation2 + $0x48] sm:$0x3] %vm279_vm1, %v1806_v0  ;;  %290 = vst.msk [vmem:[#allocation2 + $0x58] sm:$0x3] %vm279_vm1, %v1806_v0 }
  0x27   : > { %292 = vst.msk [vmem:[#allocation2 + $0x68] sm:$0x3] %vm279_vm1, %v1806_v0  ;;  %294 = vst.msk [vmem:[#allocation2 + $0x78] sm:$0x3] %vm279_vm1, %v1806_v0 }
  0x28   : > { %296 = vst.msk [vmem:[#allocation2 + $0x88] sm:$0x3] %vm279_vm1, %v1806_v0  ;;  %298 = vst.msk [vmem:[#allocation2 + $0x98] sm:$0x3] %vm279_vm1, %v1806_v0 }
  0x29 PF: > { %s1807_s21 = smov 48   ;;  %s1808_s28 = smov 32   ;;  %v1630_v25 = vld [vmem:[%s2467_s2] sm:$0xff]   ;;  %v1810_v26 = vmov 0   ;;  %v1631_v29 = vld [vmem:[%s2467_s2 + $0x8] sm:$0xff]   ;;  %v1632_v32 = vld [vmem:[%s2467_s2 + $0x10] sm:$0xff]  }
  0x2a   : > { %v322_v1 = vld [vmem:[#allocation2 + $0x10] sm:$0xff]  ;;  %v320_v3 = vld [vmem:[#allocation2] sm:$0xff]  ;;  %s1809_s29 = smov 16   ;;  %791 = vmatprep.subr.bf16.mxu0 %v1810_v26  ;;  %s1811_s17 = smov 64   ;;  %vm552_vm2 = vcmask 130048   ;;  %v1638_v36 = vld [vmem:[%s2466_s1 + $0x8] sm:$0xff]  }
  0x2b   : > { %v323_v2 = vld [vmem:[#allocation2 + $0x18] sm:$0x3]  ;;  %v321_v5 = vld [vmem:[#allocation2 + $0x8] sm:$0x3]  ;;  %v324_v6 = vld [vmem:[#allocation2 + $0x20] sm:$0xff]  ;;  %792 = vmatpush1.bf16.msra.mxu0 %v1630_v25  ;;  %s1812_s12 = smov 80  }
  0x2c   : > { %v1965_v4 = vpack.c.bf16 %v323_v2, %v322_v1  ;;  %v325_v7 = vld [vmem:[#allocation2 + $0x28] sm:$0x3]  ;;  %v1967_v8 = vpack.c.bf16 %v321_v5, %v320_v3  ;;  %v326_v23 = vld [vmem:[#allocation2 + $0x30] sm:$0xff]  ;;  %v327_v24 = vld [vmem:[#allocation2 + $0x38] sm:$0x3]  ;;  %793 = vmatprep.subr.bf16.mxu0 %v1810_v26  ;;  %vm904_vm3 = vcmask 1041408  }
  0x2d   : > { %v1969_v9 = vpack.c.bf16 %v325_v7, %v324_v6  ;;  %v1991_v28 = vpack.c.bf16 %v327_v24, %v326_v23  ;;  %v1636_v35 = vld [vmem:[%s2466_s1] sm:$0xff]   ;;  %v1633_v39 = vld [vmem:[%s2467_s2 + $0x18] sm:$0xff]   ;;  %v1640_v40 = vld [vmem:[%s2466_s1 + $0x10] ss:$0 sps:$4 sm:$0x33]   ;;  %s1813_s26 = smov 96  }
  0x2e   : > { %455 = vrot.lane.b32.xlu0 %v1965_v4, %s1807_s21  ;;  %v360_v10 = vshll.u32 %v1965_v4, 16  ;;  %v430_v11 = vrot.slane %v1967_v8, 1  ;;  %v351_v12 = vshrl.u32 %v1967_v8, 16  ;;  %v353_v13 = vshll.u32 %v1967_v8, 16  ;;  %1533 = vmatprep.subr.bf16.mxu1 %v1636_v35  ;;  %v329_v41 = vld [vmem:[#allocation2 + $0x48] sm:$0x3] }
  0x2f   : > { %v431_v14 = vrot.slane %v1965_v4, 1  ;;  %v358_v16 = vshrl.u32 %v1965_v4, 16  ;;  %v367_v18 = vshll.u32 %v1969_v9, 16  ;;  %v365_v21 = vshrl.u32 %v1969_v9, 16  ;;  %794 = vmatpush1.bf16.msra.mxu0 %v1631_v29  ;;  %1534 = vmatpush3.bf16.msra.mxu1 %v1636_v35  ;;  %v1642_v42 = vld [vmem:[%s1927_s8] sm:$0xff]   ;;  %s1814_s11 = smov 112  }
  0x30   : > { %438 = vrot.lane.b32.xlu1 %v430_v11, %s1808_s28  ;;  %v355_v15 = vrot.slane %v353_v13, 1  ;;  %v362_v17 = vrot.slane %v360_v10, 1  ;;  %v432_v30 = vrot.slane %v1969_v9, 1  ;;  %v1998_v31 = vrot.slane %v1991_v28, 1  ;;  %795 = vmatprep.subr.bf16.mxu0 %v1810_v26  ;;  %v328_v44 = vld [vmem:[#allocation2 + $0x40] sm:$0xff]  ;;  %v1635_v48 = vld [vmem:[%s2467_s2 + $0x28] sm:$0xff]  }
  0x31   : > { %v369_v22 = vrot.slane %v367_v18, 1  ;;  %v374_v33 = vshll.u32 %v1991_v28, 16  ;;  %v372_v37 = vshrl.u32 %v1991_v28, 16  ;;  %1535 = vmatprep.subr.bf16.mxu1 %v1638_v36  ;;  %vm891_vm4 = vcmask 293888   ;;  %v1634_v45 = vld [vmem:[%s2467_s2 + $0x20] sm:$0xff]   ;;  %v1643_v49 = vld [vmem:[%s1927_s8 + $0x8] sm:$0xff]  }
  0x32   : > { %v356_v19 = vor.u32 %v355_v15, %v351_v12  ;;  %v363_v20 = vor.u32 %v362_v17, %v358_v16  ;;  %v1480_v34 = vcombine.low %v432_v30, %v1998_v31  ;;  %v906_v46 = vsel %vm904_vm3, %v1640_v40, 0  ;;  %1539 = vmatprep.mubr.msk.bf16.mxu1 %vm891_vm4, %v1642_v42  ;;  %v1637_v51 = vld [vmem:[%s2467_s2 + $0x30] sm:$0xff]   ;;  %v331_v55 = vld [vmem:[#allocation2 + $0x58] sm:$0x3]  ;;  %v1641_v61 = vld [vmem:[%s2467_s2 + $0x40] sm:$0xff]   ;;  %s1815_s15 = smov [#allocation4]  }
  0x33   : > { %v370_v27 = vor.u32 %v369_v22, %v365_v21  ;;  %v376_v38 = vrot.slane %v374_v33, 1  ;;  %796 = vmatpush1.bf16.msra.mxu0 %v1632_v32  ;;  %1536 = vmatpush3.bf16.msra.mxu1 %v1638_v36  ;;  %v2038_v47 = vpack.c.bf16 %v329_v41, %v328_v44  ;;  %v330_v54 = vld [vmem:[#allocation2 + $0x50] sm:$0xff]  ;;  %v1639_v56 = vld [vmem:[%s2467_s2 + $0x38] sm:$0xff]   ;;  %v332_v3 = vld [vmem:[#allocation2 + $0x60] sm:$0xff]  ;;  %vm569_vm5 = vcmask 261120   ;;  %s1714_s16 = sshll.u32 %s1815_s15, 4  ;;  %s1715_s16 = int_to_ptr.vmem [resolvable:$false] %s1714_s16 }
  0x34   : > { %440 = vrot.lane.b32.xlu1 %v431_v14, %s1808_s28  ;;  %406 = vrot.lane.b32.xlu0 %v356_v19, %s1809_s29  ;;  %v2061_v57 = vpack.c.bf16 %v331_v55, %v330_v54  ;;  %v333_v5 = vld [vmem:[#allocation2 + $0x68] sm:$0x3]  ;;  %v334_v12 = vld [vmem:[#allocation2 + $0x70] sm:$0xff]  ;;  %v335_v13 = vld [vmem:[#allocation2 + $0x78] sm:$0x3]  ;;  %vm586_vm6 = vcmask 392192  }
  0x35   : > { %1496 = vmatprep.mubr.msk.bf16.mxu0 %vm552_vm2, %v1480_v34  ;;  %797 = vmatprep.subr.bf16.mxu0 %v1810_v26  ;;  %v377_v43 = vor.u32 %v376_v38, %v372_v37  ;;  %v381_v50 = vshll.u32 %v2038_v47, 16  ;;  %v379_v52 = vshrl.u32 %v2038_v47, 16  ;;  %v2068_v59 = vrot.slane %v2038_v47, 1  ;;  %v1644_v18 = vld [vmem:[%s1927_s8 + $0x10] sm:$0xff]   ;;  %v336_v25 = vld [vmem:[#allocation2 + $0x80] sm:$0xff]  ;;  %s1716_s27 = scalar_lea.vmem %s1715_s16, 2048 }
  0x36   : > { %1547 = vmatprep.subr.msk.bf16.mxu1 %vm904_vm3, %v1640_v40  ;;  %v2071_v60 = vrot.slane %v2061_v57, 1  ;;  %v388_v63 = vshll.u32 %v2061_v57, 16  ;;  %v386_v0 = vshrl.u32 %v2061_v57, 16  ;;  %v2093_v6 = vpack.c.bf16 %v333_v5, %v332_v3  ;;  %v338_v32 = vld [vmem:[#allocation2 + $0x90] sm:$0xff]  ;;  %v339_v33 = vld [vmem:[#allocation2 + $0x98] sm:$0x3] }
  0x37   : > { %798 = vmatpush1.bf16.msra.mxu0 %v1633_v39  ;;  %1538 = vmatpush3.bf16.msra.mxu1 %v906_v46  ;;  %v383_v53 = vrot.slane %v381_v50, 1  ;;  %v2149_v35 = vpack.c.bf16 %v339_v33, %v338_v32  ;;  %vm603_vm7 = vcmask 523264   ;;  %vm620_vm8 = vcmask 654336  }
  0x38   : > { %457 = vrot.lane.b32.xlu1 %v1969_v9, %s1807_s21  ;;  %408 = vrot.lane.b32.xlu0 %v363_v20, %s1809_s29  ;;  %v1482_v62 = vcombine.low %v2068_v59, %v2071_v60  ;;  %v390_v1 = vrot.slane %v388_v63, 1  ;;  %v395_v7 = vshll.u32 %v2093_v6, 16  ;;  %v393_v10 = vshrl.u32 %v2093_v6, 16 }
  0x39   : > { %799 = vmatprep.subr.bf16.mxu0 %v1810_v26  ;;  %v384_v58 = vor.u32 %v383_v53, %v379_v52  ;;  %v2110_v16 = vrot.slane %v2093_v6, 1  ;;  %v531_v37 = vshll.u32 %v2149_v35, 16  ;;  %v529_v38 = vshrl.u32 %v2149_v35, 16 }
  0x3a   : > { %1540 = vmatmul.mubr.msk.bf16.vlgmr.msra.gmra.mrb[0].mxu1 %vm891_vm4, %v1643_v49  ;;  %v391_v2 = vor.u32 %v390_v1, %v386_v0  ;;  %v397_v11 = vrot.slane %v395_v7, 1  ;;  %vm637_vm9 = vcmask 785408   ;;  %vm654_vm10 = vcmask 916480  }
  0x3b   : > { %800 = vmatpush1.bf16.msra.mxu0 %v1634_v45  ;;  %1543 = vmatprep.mubr.msk.bf16.mxu1 %vm891_vm4, %v1644_v18  ;;  %v533_v39 = vrot.slane %v531_v37, 1 }
  0x3c   : > { %480 = vrot.lane.b32.xlu1 %v370_v27, %s1811_s17  ;;  %478 = vrot.lane.b32.xlu0 %v363_v20, %s1811_s17  ;;  %v398_v15 = vor.u32 %v397_v11, %v393_v10  ;;  %v1645_v20 = vld [vmem:[%s1927_s8 + $0x18] sm:$0xff]  }
  0x3d   : > { %801 = vmatprep.subr.bf16.mxu0 %v1810_v26  ;;  %v534_v40 = vor.u32 %v533_v39, %v529_v38 }
  0x3f   : > { %802 = vmatpush1.bf16.msra.mxu0 %v1635_v48 }
  0x40   : > { %497 = vrot.lane.b32.xlu1 %v432_v30, %s1812_s12  ;;  %495 = vrot.lane.b32.xlu0 %v431_v14, %s1812_s12  ;;  %v2103_v14 = vpack.c.bf16 %v335_v13, %v334_v12 }
  0x41   : > { %803 = vmatprep.subr.bf16.mxu0 %v1810_v26 }
  0x42   : > { %v2113_v17 = vrot.slane %v2103_v14, 1  ;;  %v402_v21 = vshll.u32 %v2103_v14, 16  ;;  %1544 = vmatmul.mubr.msk.bf16.gmra.mrb[4].mxu1 %vm891_vm4, %v1645_v20  ;;  %v400_v22 = vshrl.u32 %v2103_v14, 16 }
  0x43   : > { %804 = vmatpush1.bf16.msra.mxu0 %v1637_v51 }
  0x44   : > { %514 = vrot.lane.b32.xlu1 %v1991_v28, %s1813_s26  ;;  %512 = vrot.lane.b32.xlu0 %v1969_v9, %s1813_s26  ;;  %v1484_v19 = vcombine.low %v2110_v16, %v2113_v17  ;;  %v404_v23 = vrot.slane %v402_v21, 1 }
  0x45   : > { %805 = vmatprep.subr.bf16.mxu0 %v1810_v26 }
  0x46   : > { %v405_v24 = vor.u32 %v404_v23, %v400_v22 }
  0x47   : > { %806 = vmatpush1.bf16.msra.mxu0 %v1639_v56 }
  0x48   : > { %537 = vrot.lane.b32.xlu1 %v377_v43, %s1814_s11  ;;  %535 = vrot.lane.b32.xlu0 %v370_v27, %s1814_s11 }
  0x49   : > { %807 = vmatprep.subr.bf16.mxu0 %v1810_v26  ;;  %v337_v26 = vld [vmem:[#allocation2 + $0x88] sm:$0x3] }
  0x4b   : > { %808 = vmatpush1.bf16.msra.mxu0 %v1641_v61 }
  0x4c   : > { %412 = vrot.lane.b32.xlu1 %v377_v43, %s1809_s29  ;;  %410 = vrot.lane.b32.xlu0 %v370_v27, %s1809_s29  ;;  %v2135_v27 = vpack.c.bf16 %v337_v26, %v336_v25 }
  0x4e   : > { %v474_v29 = vshll.u32 %v2135_v27, 16  ;;  %v494_v36 = vrot.slane %v2135_v27, 1 }
  0x50   : > { %444 = vrot.lane.b32.xlu1 %v1998_v31, %s1808_s28  ;;  %442 = vrot.lane.b32.xlu0 %v432_v30, %s1808_s28  ;;  %v472_v30 = vshrl.u32 %v2135_v27, 16 }
  0x54   : > { %461 = vrot.lane.b32.xlu1 %v2038_v47, %s1807_s21  ;;  %459 = vrot.lane.b32.xlu0 %v1991_v28, %s1807_s21 }
  0x58   : > { %484 = vrot.lane.b32.xlu1 %v384_v58, %s1811_s17  ;;  %482 = vrot.lane.b32.xlu0 %v377_v43, %s1811_s17 }
  0x5c   : > { %501 = vrot.lane.b32.xlu1 %v2068_v59, %s1812_s12  ;;  %499 = vrot.lane.b32.xlu0 %v1998_v31, %s1812_s12  ;;  %v476_v31 = vrot.slane %v474_v29, 1 }
  0x5e   : > { %v477_v34 = vor.u32 %v476_v31, %v472_v30 }
  0x60   : > { %518 = vrot.lane.b32.xlu1 %v2061_v57, %s1813_s26  ;;  %516 = vrot.lane.b32.xlu0 %v2038_v47, %s1813_s26 }
  0x64   : > { %541 = vrot.lane.b32.xlu1 %v391_v2, %s1814_s11  ;;  %539 = vrot.lane.b32.xlu0 %v384_v58, %s1814_s11 }
  0x68   : > { %416 = vrot.lane.b32.xlu1 %v391_v2, %s1809_s29  ;;  %414 = vrot.lane.b32.xlu0 %v384_v58, %s1809_s29 }
  0x6c   : > { %448 = vrot.lane.b32.xlu1 %v2071_v60, %s1808_s28  ;;  %446 = vrot.lane.b32.xlu0 %v2068_v59, %s1808_s28 }
  0x70   : > { %465 = vrot.lane.b32.xlu1 %v2093_v6, %s1807_s21  ;;  %463 = vrot.lane.b32.xlu0 %v2061_v57, %s1807_s21 }
  0x74   : > { %488 = vrot.lane.b32.xlu1 %v398_v15, %s1811_s17  ;;  %486 = vrot.lane.b32.xlu0 %v391_v2, %s1811_s17 }
  0x78   : > { %505 = vrot.lane.b32.xlu1 %v2110_v16, %s1812_s12  ;;  %503 = vrot.lane.b32.xlu0 %v2071_v60, %s1812_s12 }
  0x7c   : > { %522 = vrot.lane.b32.xlu1 %v2103_v14, %s1813_s26  ;;  %520 = vrot.lane.b32.xlu0 %v2093_v6, %s1813_s26 }
  0x80   : > { %545 = vrot.lane.b32.xlu1 %v405_v24, %s1814_s11  ;;  %543 = vrot.lane.b32.xlu0 %v398_v15, %s1814_s11 }
  0x84   : > { %420 = vrot.lane.b32.xlu1 %v405_v24, %s1809_s29  ;;  %418 = vrot.lane.b32.xlu0 %v398_v15, %s1809_s29 }
  0x88   : > { %452 = vrot.lane.b32.xlu1 %v2113_v17, %s1808_s28  ;;  %450 = vrot.lane.b32.xlu0 %v2110_v16, %s1808_s28  ;;  %s1525_s28 = sshll.u32 %s1792_s22, 10  ;;  %s2389_s22 = scalar_lea.sflag [#allocation5], %s251_s10 }
  0x8c   : > { %469 = vrot.lane.b32.xlu1 %v2135_v27, %s1807_s21  ;;  %467 = vrot.lane.b32.xlu0 %v2103_v14, %s1807_s21 }
  0x90   : > { %492 = vrot.lane.b32.xlu1 %v477_v34, %s1811_s17  ;;  %490 = vrot.lane.b32.xlu0 %v405_v24, %s1811_s17 }
  0x94   : > { %509 = vrot.lane.b32.xlu1 %v494_v36, %s1812_s12  ;;  %507 = vrot.lane.b32.xlu0 %v2113_v17, %s1812_s12 }
  0x98   : > { %526 = vrot.lane.b32.xlu1 %v2149_v35, %s1813_s26  ;;  %524 = vrot.lane.b32.xlu0 %v2135_v27, %s1813_s26 }
  0x9c   : > { %549 = vrot.lane.b32.xlu1 %v534_v40, %s1814_s11  ;;  %547 = vrot.lane.b32.xlu0 %v477_v34, %s1814_s11 }
  0xa0   : > { %v456_v41 = vpop.permute.xlu0 %455 }
  0xa2   : > { %v439_v42 = vpop.permute.xlu1 %438 }
  0xa6   : > { %v441_v43 = vpop.permute.xlu1 %440  ;;  %v407_v44 = vpop.permute.xlu0 %406 }
  0xa7   : > { %v554_v51 = vsel %vm552_vm2, %v1967_v8, %v407_v44 }
  0xa8   : > { %v571_v55 = vsel %vm569_vm5, %v554_v51, %v439_v42 }
  0xa9   : > { %v588_v63 = vsel %vm586_vm6, %v571_v55, %v456_v41 }
  0xaa   : > { %v458_v45 = vpop.permute.xlu1 %457  ;;  %v409_v46 = vpop.permute.xlu0 %408 }
  0xab   : > { %v556_v50 = vsel %vm552_vm2, %v1965_v4, %v409_v46 }
  0xac   : > { %v573_v52 = vsel %vm569_vm5, %v556_v50, %v441_v43 }
  0xad   : > { %v590_v56 = vsel %vm586_vm6, %v573_v52, %v458_v45 }
  0xae   : > { %v481_v48 = vpop.permute.xlu1 %480  ;;  %v479_v49 = vpop.permute.xlu0 %478 }
  0xaf   : > { %v607_v4 = vsel %vm603_vm7, %v590_v56, %v481_v48  ;;  %v605_v8 = vsel %vm603_vm7, %v588_v63, %v479_v49  ;;  %v551_v63 = vrot.slane %v2149_v35, 1 }
  0xb1   : > { %v1486_v35 = vcombine.low %v494_v36, %v551_v63 }
  0xb2   : > { %v498_v53 = vpop.permute.xlu1 %497  ;;  %v496_v54 = vpop.permute.xlu0 %495 }
  0xb3   : > { %v624_v0 = vsel %vm620_vm8, %v607_v4, %v498_v53  ;;  %v622_v1 = vsel %vm620_vm8, %v605_v8, %v496_v54 }
  0xb6   : > { %v515_v58 = vpop.permute.xlu1 %514  ;;  %v513_v61 = vpop.permute.xlu0 %512 }
  0xb7   : > { %v641_v2 = vsel %vm637_vm9, %v624_v0, %v515_v58  ;;  %v639_v3 = vsel %vm637_vm9, %v622_v1, %v513_v61 }
  0xba   : > { %v538_v5 = vpop.permute.xlu1 %537  ;;  %v536_v7 = vpop.permute.xlu0 %535 }
  0xbb   : > { %v658_v10 = vsel %vm654_vm10, %v641_v2, %v538_v5  ;;  %v656_v11 = vsel %vm654_vm10, %v639_v3, %v536_v7 }
  0xbc   : > { %v1479_v12 = vcombine.low %v656_v11, %v658_v10 }
  0xbe   : > { %v413_v13 = vpop.permute.xlu1 %412  ;;  %824 = vmatmul.mubr.bf16.vlgmr.msra.gmra.mrb[0].mxu0 %v1479_v12  ;;  %v411_v15 = vpop.permute.xlu0 %410 }
  0xbf   : > { %1497 = vmatprep.mubr.msk.bf16.mxu0 %vm552_vm2, %v1482_v62  ;;  %v560_v29 = vsel %vm552_vm2, %v1991_v28, %v413_v13  ;;  %v558_v30 = vsel %vm552_vm2, %v1969_v9, %v411_v15 }
  0xc2   : > { %v445_v18 = vpop.permute.xlu1 %444  ;;  %v443_v20 = vpop.permute.xlu0 %442 }
  0xc3   : > { %v577_v31 = vsel %vm569_vm5, %v560_v29, %v445_v18  ;;  %v575_v59 = vsel %vm569_vm5, %v558_v30, %v443_v20 }
  0xc6   : > { %v462_v21 = vpop.permute.xlu1 %461  ;;  %v460_v22 = vpop.permute.xlu0 %459 }
  0xc7   : > { %v594_v32 = vsel %vm586_vm6, %v577_v31, %v462_v21  ;;  %v592_v33 = vsel %vm586_vm6, %v575_v59, %v460_v22 }
  0xca   : > { %v485_v23 = vpop.permute.xlu1 %484  ;;  %v483_v24 = vpop.permute.xlu0 %482 }
  0xcb   : > { %v611_v34 = vsel %vm603_vm7, %v594_v32, %v485_v23  ;;  %v609_v37 = vsel %vm603_vm7, %v592_v33, %v483_v24 }
  0xce   : > { %v502_v25 = vpop.permute.xlu1 %501  ;;  %v500_v26 = vpop.permute.xlu0 %499 }
  0xcf   : > { %v628_v38 = vsel %vm620_vm8, %v611_v34, %v502_v25  ;;  %v626_v28 = vsel %vm620_vm8, %v609_v37, %v500_v26 }
  0xd2   : > { %v519_v60 = vpop.permute.xlu1 %518  ;;  %v517_v62 = vpop.permute.xlu0 %516 }
  0xd3   : > { %v645_v9 = vsel %vm637_vm9, %v628_v38, %v519_v60  ;;  %v643_v39 = vsel %vm637_vm9, %v626_v28, %v517_v62 }
  0xd6   : > { %v542_v40 = vpop.permute.xlu1 %541  ;;  %v540_v41 = vpop.permute.xlu0 %539 }
  0xd7   : > { %v662_v42 = vsel %vm654_vm10, %v645_v9, %v542_v40  ;;  %v660_v43 = vsel %vm654_vm10, %v643_v39, %v540_v41 }
  0xd8   : > { %v1481_v44 = vcombine.low %v660_v43, %v662_v42 }
  0xda   : > { %v417_v45 = vpop.permute.xlu1 %416  ;;  %832 = vmatmul.mubr.bf16.gmra.mrb[4].mxu0 %v1481_v44  ;;  %v415_v46 = vpop.permute.xlu0 %414 }
  0xdb   : > { %1498 = vmatprep.mubr.msk.bf16.mxu0 %vm552_vm2, %v1484_v19  ;;  %v564_v56 = vsel %vm552_vm2, %v2061_v57, %v417_v45  ;;  %v562_v58 = vsel %vm552_vm2, %v2038_v47, %v415_v46 }
  0xde   : > { %v449_v48 = vpop.permute.xlu1 %448  ;;  %v447_v49 = vpop.permute.xlu0 %446 }
  0xdf   : > { %v581_v61 = vsel %vm569_vm5, %v564_v56, %v449_v48  ;;  %v579_v16 = vsel %vm569_vm5, %v562_v58, %v447_v49 }
  0xe2   : > { %v466_v50 = vpop.permute.xlu1 %465  ;;  %v464_v51 = vpop.permute.xlu0 %463 }
  0xe3   : > { %v598_v4 = vsel %vm586_vm6, %v581_v61, %v466_v50  ;;  %v596_v8 = vsel %vm586_vm6, %v579_v16, %v464_v51  ;;  %v1511_v51 = vld [vmem:[%s2468_s3] ss:$0 sm:$0xff] }
  0xe6   : > { %v489_v52 = vpop.permute.xlu1 %488  ;;  %v487_v53 = vpop.permute.xlu0 %486 }
  0xe7   : > { %v615_v0 = vsel %vm603_vm7, %v598_v4, %v489_v52  ;;  %v613_v1 = vsel %vm603_vm7, %v596_v8, %v487_v53 }
  0xea   : > { %v506_v54 = vpop.permute.xlu1 %505  ;;  %v504_v55 = vpop.permute.xlu0 %503 }
  0xeb   : > { %v632_v57 = vsel %vm620_vm8, %v615_v0, %v506_v54  ;;  %v630_v47 = vsel %vm620_vm8, %v613_v1, %v504_v55 }
  0xee   : > { %v523_v17 = vpop.permute.xlu1 %522  ;;  %v521_v19 = vpop.permute.xlu0 %520 }
  0xef   : > { %v649_v2 = vsel %vm637_vm9, %v632_v57, %v523_v17  ;;  %v647_v3 = vsel %vm637_vm9, %v630_v47, %v521_v19 }
  0xf2   : > { %v546_v5 = vpop.permute.xlu1 %545  ;;  %v544_v7 = vpop.permute.xlu0 %543 }
  0xf3   : > { %v666_v10 = vsel %vm654_vm10, %v649_v2, %v546_v5  ;;  %v664_v11 = vsel %vm654_vm10, %v647_v3, %v544_v7 }
  0xf4   : > { %v1483_v12 = vcombine.low %v664_v11, %v666_v10 }
  0xf6   : > { %v421_v13 = vpop.permute.xlu1 %420  ;;  %840 = vmatmul.mubr.bf16.gmra.mrb[8].mxu0 %v1483_v12  ;;  %v419_v15 = vpop.permute.xlu0 %418 }
  0xf7   : > { %1499 = vmatprep.mubr.msk.bf16.mxu0 %vm552_vm2, %v1486_v35  ;;  %v568_v27 = vsel %vm552_vm2, %v2103_v14, %v421_v13  ;;  %v566_v36 = vsel %vm552_vm2, %v2093_v6, %v419_v15 }
  0xfa   : > { %v453_v18 = vpop.permute.xlu1 %452  ;;  %v451_v20 = vpop.permute.xlu0 %450 }
  0xfb   : > { %v585_v29 = vsel %vm569_vm5, %v568_v27, %v453_v18  ;;  %v583_v30 = vsel %vm569_vm5, %v566_v36, %v451_v20 }
  0xfe   : > { %v470_v21 = vpop.permute.xlu1 %469  ;;  %v468_v22 = vpop.permute.xlu0 %467 }
  0xff   : > { %v602_v60 = vsel %vm586_vm6, %v585_v29, %v470_v21  ;;  %v600_v62 = vsel %vm586_vm6, %v583_v30, %v468_v22 }
 0x102   : > { %v493_v23 = vpop.permute.xlu1 %492  ;;  %v491_v24 = vpop.permute.xlu0 %490 }
 0x103   : > { %v619_v32 = vsel %vm603_vm7, %v602_v60, %v493_v23  ;;  %v617_v33 = vsel %vm603_vm7, %v600_v62, %v491_v24  ;;  %v1045_v62 = vld [vmem:[#allocation3 + $0x8] sm:$0xff] }
 0x106   : > { %v510_v25 = vpop.permute.xlu1 %509  ;;  %v508_v26 = vpop.permute.xlu0 %507 }
 0x107   : > { %v636_v34 = vsel %vm620_vm8, %v619_v32, %v510_v25  ;;  %v634_v14 = vsel %vm620_vm8, %v617_v33, %v508_v26  ;;  %v1046_v32 = vld [vmem:[#allocation3 + $0x10] sm:$0xff]  ;;  %v1047_v33 = vld [vmem:[#allocation3 + $0x18] sm:$0xff] }
 0x10a   : > { %v527_v31 = vpop.permute.xlu1 %526  ;;  %v525_v59 = vpop.permute.xlu0 %524 }
 0x10b   : > { %v653_v6 = vsel %vm637_vm9, %v636_v34, %v527_v31  ;;  %v651_v37 = vsel %vm637_vm9, %v634_v14, %v525_v59  ;;  %v1044_v31 = vld [vmem:[#allocation3] sm:$0xff]  ;;  %v1049_v14 = vld [vmem:[#allocation3 + $0x28] sm:$0xff] }
 0x10c   : > { %v1048_v34 = vld [vmem:[#allocation3 + $0x20] sm:$0xff] }
 0x10d   : > { %v1541_v41 = vpop.f32.mrb[0].mxu1 }
 0x10e   : > { %v550_v38 = vpop.permute.xlu1 %549  ;;  %v548_v28 = vpop.permute.xlu0 %547 }
 0x10f   : > { %v670_v9 = vsel %vm654_vm10, %v653_v6, %v550_v38  ;;  %v668_v39 = vsel %vm654_vm10, %v651_v37, %v548_v28  ;;  %v942_v42 = vpop.f32.mrb[1].mxu1  ;;  %v1050_v37 = vld [vmem:[#allocation3 + $0x30] sm:$0xff] }
 0x110   : > { %v1485_v40 = vcombine.low %v668_v39, %v670_v9  ;;  %v1542_v43 = vpop.f32.mrb[2].mxu1  ;;  %v1051_v9 = vld [vmem:[#allocation3 + $0x38] sm:$0xff] }
 0x111   : > { %v945_v44 = vpop.f32.mrb[3].mxu1 }
 0x112   : > { %848 = vmatmul.mubr.bf16.gmra.mrb[12].mxu0 %v1485_v40 }
 0x115   : > { %v1545_v45 = vpop.f32.mrb[4].mxu1 }
 0x116   : > { %v958_v46 = vpop.f32.mrb[5].mxu1 }
 0x117   : > { %v1546_v48 = vpop.f32.mrb[6].mxu1 }
 0x118   : > { %v961_v49 = vpop.f32.mrb[7].mxu1 }
 0x191   : > { %v825_v50 = vpop.f32.mrb[0].mxu0 }
 0x192   : > { %v943_v52 = vadd.f32 %v942_v42, %v825_v50  ;;  %v827_v53 = vpop.f32.mrb[1].mxu0 }
 0x193   : > { %v828_v54 = vpop.f32.mrb[2].mxu0 }
 0x194   : > { %v980_v55 = vadd.f32 %v1511_v51, %v943_v52  ;;  %v946_v56 = vadd.f32 %v945_v44, %v828_v54  ;;  %v830_v58 = vpop.f32.mrb[3].mxu0 }
 0x196   : > { %1646 = vtanh.f32 %v980_v55  ;;  %v981_v61 = vadd.f32 %v1511_v51, %v946_v56  ;;  %v1512_v30 = vmul.f32 -1.442695, %v980_v55 }
 0x198   : > { %1648 = vtanh.f32 %v981_v61  ;;  %v1513_v60 = vmul.f32 -1.442695, %v981_v61 }
 0x1a0   : > { %v1647_v16 = vpop.eup %1646 }
 0x1a1   : > { %1100 = vrot.lane.b32.xlu0 %v1647_v16, %s1812_s12 }
 0x1a2   : > { %v1649_v17 = vpop.eup %1648 }
 0x1a3   : > { %1102 = vrot.lane.b32.xlu1 %v1649_v17, %s1812_s12 }
 0x1ad   : > { %v833_v19 = vpop.f32.mrb[4].mxu0 }
 0x1ae   : > { %v951_v63 = vadd.f32 %v1541_v41, %v833_v19  ;;  %v835_v4 = vpop.f32.mrb[5].mxu0 }
 0x1af   : > { %v836_v8 = vpop.f32.mrb[6].mxu0 }
 0x1b0   : > { %v2248_v0 = vadd.f32 %v1511_v51, %v951_v63  ;;  %v954_v1 = vadd.f32 %v1542_v43, %v836_v8  ;;  %v838_v57 = vpop.f32.mrb[7].mxu0 }
 0x1b2   : > { %1650 = vtanh.f32 %v2248_v0  ;;  %v983_v47 = vadd.f32 %v1511_v51, %v954_v1  ;;  %v1514_v40 = vmul.f32 -1.442695, %v2248_v0 }
 0x1b4   : > { %1652 = vtanh.f32 %v983_v47  ;;  %v1515_v42 = vmul.f32 -1.442695, %v983_v47 }
 0x1bc   : > { %v1651_v2 = vpop.eup %1650 }
 0x1bd   : > { %1104 = vrot.lane.b32.xlu0 %v1651_v2, %s1812_s12 }
 0x1be   : > { %v1653_v3 = vpop.eup %1652 }
 0x1bf   : > { %1106 = vrot.lane.b32.xlu1 %v1653_v3, %s1812_s12 }
 0x1c9   : > { %v841_v5 = vpop.f32.mrb[8].mxu0 }
 0x1ca   : > { %v959_v7 = vadd.f32 %v958_v46, %v841_v5  ;;  %v843_v35 = vpop.f32.mrb[9].mxu0 }
 0x1cb   : > { %v844_v10 = vpop.f32.mrb[10].mxu0 }
 0x1cc   : > { %v2253_v11 = vadd.f32 %v1511_v51, %v959_v7  ;;  %v962_v12 = vadd.f32 %v961_v49, %v844_v10  ;;  %v846_v13 = vpop.f32.mrb[11].mxu0 }
 0x1ce   : > { %1654 = vtanh.f32 %v2253_v11  ;;  %v2256_v15 = vadd.f32 %v1511_v51, %v962_v12  ;;  %v1516_v53 = vmul.f32 -1.442695, %v2253_v11 }
 0x1d0   : > { %1656 = vtanh.f32 %v2256_v15  ;;  %v1517_v55 = vmul.f32 -1.442695, %v2256_v15 }
 0x1d8   : > { %v1655_v18 = vpop.eup %1654 }
 0x1d9   : > { %1108 = vrot.lane.b32.xlu0 %v1655_v18, %s1812_s12 }
 0x1da   : > { %v1657_v20 = vpop.eup %1656 }
 0x1db   : > { %1110 = vrot.lane.b32.xlu1 %v1657_v20, %s1812_s12 }
 0x1e5   : > { %v849_v21 = vpop.f32.mrb[12].mxu0 }
 0x1e6   : > { %v967_v22 = vadd.f32 %v1545_v45, %v849_v21  ;;  %v851_v23 = vpop.f32.mrb[13].mxu0 }
 0x1e7   : > { %v852_v24 = vpop.f32.mrb[14].mxu0 }
 0x1e8   : > { %v2261_v25 = vadd.f32 %v1511_v51, %v967_v22  ;;  %v970_v26 = vadd.f32 %v1546_v48, %v852_v24  ;;  %v854_v27 = vpop.f32.mrb[15].mxu0 }
 0x1ea   : > { %1658 = vtanh.f32 %v2261_v25  ;;  %v2264_v36 = vadd.f32 %v1511_v51, %v970_v26  ;;  %v1518_v0 = vmul.f32 -1.442695, %v2261_v25 }
 0x1ec   : > { %1660 = vtanh.f32 %v2264_v36  ;;  %v1519_v57 = vmul.f32 -1.442695, %v2264_v36 }
 0x1ed   : > { %1662 = vpow2.f32 %v1512_v30 }
 0x1ee   : > { %1664 = vpow2.f32 %v1513_v60 }
 0x1f4   : > { %v1659_v29 = vpop.eup %1658 }
 0x1f5   : > { %1112 = vrot.lane.b32.xlu0 %v1659_v29, %s1812_s12 }
 0x1f6   : > { %v1661_v59 = vpop.eup %1660 }
 0x1f7   : > { %1114 = vrot.lane.b32.xlu1 %v1661_v59, %s1812_s12  ;;  %v1663_v6 = vpop.eup %1662 }
 0x1f8   : > { %v1665_v38 = vpop.eup %1664  ;;  %v1012_v28 = vadd.f32 1.0, %v1663_v6 }
 0x1f9   : > { %1060 = vrot.lane.b32.xlu0 %v1044_v31, %s1809_s29  ;;  %v1013_v39 = vadd.f32 1.0, %v1665_v38 }
 0x1fa   : > { %1666 = vrcp.f32 %v1012_v28 }
 0x1fb   : > { %1062 = vrot.lane.b32.xlu1 %v1045_v62, %s1809_s29  ;;  %1668 = vrcp.f32 %v1013_v39 }
 0x1fc   : > { %1670 = vpow2.f32 %v1514_v40 }
 0x1fd   : > { %1064 = vrot.lane.b32.xlu0 %v1046_v32, %s1809_s29  ;;  %1672 = vpow2.f32 %v1515_v42 }
 0x1ff   : > { %1066 = vrot.lane.b32.xlu1 %v1047_v33, %s1809_s29 }
 0x201   : > { %1068 = vrot.lane.b32.xlu0 %v1048_v34, %s1809_s29 }
 0x203   : > { %1070 = vrot.lane.b32.xlu1 %v1049_v14, %s1809_s29 }
 0x204   : > { %v2278_v41 = vpop.eup %1666 }
 0x205   : > { %1072 = vrot.lane.b32.xlu0 %v1050_v37, %s1809_s29  ;;  %v2281_v45 = vpop.eup %1668 }
 0x206   : > { %v1671_v49 = vpop.eup %1670 }
 0x207   : > { %1074 = vrot.lane.b32.xlu1 %v1051_v9, %s1809_s29  ;;  %v1673_v50 = vpop.eup %1672  ;;  %v1014_v51 = vadd.f32 1.0, %v1671_v49 }
 0x208   : > { %v1015_v52 = vadd.f32 1.0, %v1673_v50 }
 0x209   : > { %1674 = vrcp.f32 %v1014_v51 }
 0x20a   : > { %1676 = vrcp.f32 %v1015_v52 }
 0x20b   : > { %1678 = vpow2.f32 %v1516_v53 }
 0x20c   : > { %1680 = vpow2.f32 %v1517_v55 }
 0x213   : > { %v1101_v43 = vpop.permute.xlu0 %1100  ;;  %v2287_v54 = vpop.eup %1674 }
 0x214   : > { %v1124_v44 = vmul.f32 %v2278_v41, %v1101_v43  ;;  %v2291_v61 = vpop.eup %1676 }
 0x215   : > { %v1103_v46 = vpop.permute.xlu1 %1102  ;;  %v1679_v19 = vpop.eup %1678 }
 0x216   : > { %1140 = vrot.lane.b32.xlu0 %v1124_v44, %s1809_s29  ;;  %v1125_v48 = vmul.f32 %v2281_v45, %v1103_v46  ;;  %v1681_v63 = vpop.eup %1680  ;;  %v1016_v4 = vadd.f32 1.0, %v1679_v19 }
 0x217   : > { %v1017_v8 = vadd.f32 1.0, %v1681_v63 }
 0x218   : > { %1142 = vrot.lane.b32.xlu1 %v1125_v48, %s1809_s29  ;;  %1682 = vrcp.f32 %v1016_v4 }
 0x219   : > { %1684 = vrcp.f32 %v1017_v8 }
 0x21a   : > { %1686 = vpow2.f32 %v1518_v0 }
 0x21b   : > { %1688 = vpow2.f32 %v1519_v57 }
 0x222   : > { %v2297_v1 = vpop.eup %1682 }
 0x223   : > { %v2301_v3 = vpop.eup %1684 }
 0x224   : > { %v1687_v35 = vpop.eup %1686 }
 0x225   : > { %v1689_v10 = vpop.eup %1688  ;;  %v1018_v11 = vadd.f32 1.0, %v1687_v35 }
 0x226   : > { %v1019_v12 = vadd.f32 1.0, %v1689_v10 }
 0x227   : > { %1690 = vrcp.f32 %v1018_v11 }
 0x228   : > { %1692 = vrcp.f32 %v1019_v12 }
 0x22f   : > { %v1105_v56 = vpop.permute.xlu0 %1104 }
 0x230   : > { %v1126_v58 = vmul.f32 %v2287_v54, %v1105_v56 }
 0x231   : > { %v1107_v16 = vpop.permute.xlu1 %1106  ;;  %v2306_v13 = vpop.eup %1690 }
 0x232   : > { %1144 = vrot.lane.b32.xlu0 %v1126_v58, %s1809_s29  ;;  %v1127_v17 = vmul.f32 %v2291_v61, %v1107_v16  ;;  %v2309_v20 = vpop.eup %1692 }
 0x234   : > { %1146 = vrot.lane.b32.xlu1 %v1127_v17, %s1809_s29 }
 0x24b   : > { %v1109_v47 = vpop.permute.xlu0 %1108 }
 0x24c   : > { %v1128_v2 = vmul.f32 %v2297_v1, %v1109_v47 }
 0x24d   : > { %v1111_v5 = vpop.permute.xlu1 %1110 }
 0x24e   : > { %1148 = vrot.lane.b32.xlu0 %v1128_v2, %s1809_s29  ;;  %v1129_v7 = vmul.f32 %v2301_v3, %v1111_v5 }
 0x250   : > { %1150 = vrot.lane.b32.xlu1 %v1129_v7, %s1809_s29 }
 0x267   : > { %v1113_v15 = vpop.permute.xlu0 %1112 }
 0x268   : > { %v1130_v18 = vmul.f32 %v2306_v13, %v1113_v15 }
 0x269   : > { %v1115_v21 = vpop.permute.xlu1 %1114 }
 0x26a   : > { %1152 = vrot.lane.b32.xlu0 %v1130_v18, %s1809_s29  ;;  %v1131_v22 = vmul.f32 %v2309_v20, %v1115_v21 }
 0x26b   : > { %v1061_v23 = vpop.permute.xlu0 %1060 }
 0x26c   : > { %1154 = vrot.lane.b32.xlu1 %v1131_v22, %s1809_s29  ;;  %v1084_v30 = vmul.f32 %v2278_v41, %v1061_v23 }
 0x26d   : > { %v1063_v24 = vpop.permute.xlu1 %1062 }
 0x26e   : > { %v1085_v62 = vmul.f32 %v2281_v45, %v1063_v24 }
 0x26f   : > { %v1065_v25 = vpop.permute.xlu0 %1064 }
 0x270   : > { %v1086_v6 = vmul.f32 %v2287_v54, %v1065_v25 }
 0x271   : > { %v1067_v26 = vpop.permute.xlu1 %1066 }
 0x272   : > { %v1087_v28 = vmul.f32 %v2291_v61, %v1067_v26 }
 0x273   : > { %v1069_v27 = vpop.permute.xlu0 %1068 }
 0x274   : > { %v1088_v43 = vmul.f32 %v2297_v1, %v1069_v27 }
 0x275   : > { %v1071_v36 = vpop.permute.xlu1 %1070 }
 0x276   : > { %v1089_v48 = vmul.f32 %v2301_v3, %v1071_v36 }
 0x277   : > { %v1073_v29 = vpop.permute.xlu0 %1072 }
 0x278   : > { %v1090_v53 = vmul.f32 %v2306_v13, %v1073_v29 }
 0x279   : > { %v1075_v31 = vpop.permute.xlu1 %1074 }
 0x27a   : > { %v1091_v58 = vmul.f32 %v2309_v20, %v1075_v31 }
 0x288   : > { %v1141_v59 = vpop.permute.xlu0 %1140 }
 0x289   : > { %v1164_v60 = vadd.f32 %v1141_v59, %v1084_v30 }
 0x28a   : > { %v1143_v32 = vpop.permute.xlu1 %1142 }
 0x28b   : > { %1694 = vtanh.f32 %v1164_v60  ;;  %v1165_v33 = vadd.f32 %v1143_v32, %v1085_v62 }
 0x28d   : > { %1696 = vtanh.f32 %v1165_v33 }
 0x295   : > { %v1695_v34 = vpop.eup %1694 }
 0x296   : > { %1188 = vrot.lane.b32.xlu0 %v1695_v34, %s1809_s29 }
 0x297   : > { %v1697_v14 = vpop.eup %1696 }
 0x298   : > { %1190 = vrot.lane.b32.xlu1 %v1697_v14, %s1809_s29 }
 0x2a4   : > { %v1145_v37 = vpop.permute.xlu0 %1144 }
 0x2a5   : > { %v1166_v38 = vadd.f32 %v1145_v37, %v1086_v6 }
 0x2a6   : > { %v1147_v9 = vpop.permute.xlu1 %1146 }
 0x2a7   : > { %1698 = vtanh.f32 %v1166_v38  ;;  %v1167_v39 = vadd.f32 %v1147_v9, %v1087_v28 }
 0x2a9   : > { %1700 = vtanh.f32 %v1167_v39 }
 0x2b1   : > { %v1699_v40 = vpop.eup %1698 }
 0x2b2   : > { %1192 = vrot.lane.b32.xlu0 %v1699_v40, %s1809_s29 }
 0x2b3   : > { %v1701_v42 = vpop.eup %1700 }
 0x2b4   : > { %1194 = vrot.lane.b32.xlu1 %v1701_v42, %s1809_s29 }
 0x2c0   : > { %v1149_v44 = vpop.permute.xlu0 %1148 }
 0x2c1   : > { %v1168_v46 = vadd.f32 %v1149_v44, %v1088_v43 }
 0x2c2   : > { %v1151_v49 = vpop.permute.xlu1 %1150 }
 0x2c3   : > { %1702 = vtanh.f32 %v1168_v46  ;;  %v1169_v50 = vadd.f32 %v1151_v49, %v1089_v48 }
 0x2c5   : > { %1704 = vtanh.f32 %v1169_v50 }
 0x2cd   : > { %v1703_v51 = vpop.eup %1702 }
 0x2ce   : > { %1196 = vrot.lane.b32.xlu0 %v1703_v51, %s1809_s29 }
 0x2cf   : > { %v1705_v52 = vpop.eup %1704 }
 0x2d0   : > { %1198 = vrot.lane.b32.xlu1 %v1705_v52, %s1809_s29 }
 0x2dc   : > { %v1153_v55 = vpop.permute.xlu0 %1152 }
 0x2dd   : > { %v1170_v56 = vadd.f32 %v1153_v55, %v1090_v53 }
 0x2de   : > { %v1155_v16 = vpop.permute.xlu1 %1154 }
 0x2df   : > { %1706 = vtanh.f32 %v1170_v56  ;;  %v1171_v17 = vadd.f32 %v1155_v16, %v1091_v58 }
 0x2e1   : > { %1708 = vtanh.f32 %v1171_v17 }
 0x2e9   : > { %v1707_v19 = vpop.eup %1706 }
 0x2ea   : > { %1200 = vrot.lane.b32.xlu0 %v1707_v19, %s1809_s29 }
 0x2eb   : > { %v1709_v63 = vpop.eup %1708 }
 0x2ec   : > { %1202 = vrot.lane.b32.xlu1 %v1709_v63, %s1809_s29  ;;  %s1343_s29 = sshll.u32 %s1934_s23, 4  ;;  %s2382_s29 = int_to_ptr.vmem [resolvable:$true] %s1343_s29 }
 0x2ed   : > { %p1717_p5 = scmp.lt.s32.totalorder %s2382_s29, %s1715_s16 }
 0x2ee   : > { %1228 = vrot.lane.b32.xlu0 %v1164_v60, %s1814_s11 }
 0x2f0   : > { %1230 = vrot.lane.b32.xlu1 %v1165_v33, %s1814_s11 }
 0x2f2   : > { %1232 = vrot.lane.b32.xlu0 %v1166_v38, %s1814_s11 }
 0x2f4   : > { %1234 = vrot.lane.b32.xlu1 %v1167_v39, %s1814_s11 }
 0x2f6   : > { %1236 = vrot.lane.b32.xlu0 %v1168_v46, %s1814_s11 }
 0x2f8   : > { %1238 = vrot.lane.b32.xlu1 %v1169_v50, %s1814_s11 }
 0x2fa   : > { %1240 = vrot.lane.b32.xlu0 %v1170_v56, %s1814_s11 }
 0x2fc   : > { %1242 = vrot.lane.b32.xlu1 %v1171_v17, %s1814_s11  ;;  %s1710_s11 = scalar_lea.vmem %s2382_s29, 1024 }
 0x2fd   : > { %p1711_p1 = scmp.ne.s32.totalorder %s2382_s29, %s1710_s11  ;;  %p1718_p6 = scmp.lt.s32.totalorder %s1716_s27, %s1710_s11 }
 0x2ff   : > { %p1712_p2 = pnand %p1711_p1, %p1897_p3  ;;  %p1719_p7 = por %p1718_p6, %p1717_p5 }
 0x301   : > { %p1713_p4 = pneg %p1712_p2 }
 0x303   : > { %p1720_p8 = pnand %p1719_p7, %p1713_p4 }
 0x308   : > { %v1189_v4 = vpop.permute.xlu0 %1188 }
 0x309   : > { %v1212_v8 = vmul.f32 %v2278_v41, %v1189_v4 }
 0x30a   : > { %v1191_v0 = vpop.permute.xlu1 %1190 }
 0x30b   : > { %1268 = vrot.lane.b32.xlu0 %v1212_v8, %s1813_s26  ;;  %v1213_v57 = vmul.f32 %v2281_v45, %v1191_v0 }
 0x30d   : > { %1270 = vrot.lane.b32.xlu1 %v1213_v57, %s1813_s26 }
 0x324   : > { %v1193_v47 = vpop.permute.xlu0 %1192 }
 0x325   : > { %v1214_v2 = vmul.f32 %v2287_v54, %v1193_v47 }
 0x326   : > { %v1195_v5 = vpop.permute.xlu1 %1194 }
 0x327   : > { %1272 = vrot.lane.b32.xlu0 %v1214_v2, %s1813_s26  ;;  %v1215_v7 = vmul.f32 %v2291_v61, %v1195_v5 }
 0x329   : > { %1274 = vrot.lane.b32.xlu1 %v1215_v7, %s1813_s26 }
 0x340   : > { %v1197_v35 = vpop.permute.xlu0 %1196 }
 0x341   : > { %v1216_v41 = vmul.f32 %v2297_v1, %v1197_v35 }
 0x342   : > { %v1199_v10 = vpop.permute.xlu1 %1198 }
 0x343   : > { %1276 = vrot.lane.b32.xlu0 %v1216_v41, %s1813_s26  ;;  %v1217_v45 = vmul.f32 %v2301_v3, %v1199_v10 }
 0x345   : > { %1278 = vrot.lane.b32.xlu1 %v1217_v45, %s1813_s26 }
 0x35c   : > { %v1201_v54 = vpop.permute.xlu0 %1200 }
 0x35d   : > { %v1218_v11 = vmul.f32 %v2306_v13, %v1201_v54 }
 0x35e   : > { %v1203_v12 = vpop.permute.xlu1 %1202 }
 0x35f   : > { %1280 = vrot.lane.b32.xlu0 %v1218_v11, %s1813_s26  ;;  %v1219_v61 = vmul.f32 %v2309_v20, %v1203_v12 }
 0x360   : > { %v1229_v1 = vpop.permute.xlu0 %1228 }
 0x361   : > { %1252 = vst.msk [vmem:[#allocation3] sm:$0xff] %vm552_vm2, %v1229_v1  ;;  %1309 = vst.msk [vmem:[%s1934_s23] sm:$0xff] %vm552_vm2, %v1229_v1  ;;  %1282 = vrot.lane.b32.xlu1 %v1219_v61, %s1813_s26  ;;  %s2380_s26 = scalar_lea.hbm %s2470_s5, %s1525_s28 }
 0x362   : > { %v1231_v3 = vpop.permute.xlu1 %1230 }
 0x363   : > { %1253 = vst.msk [vmem:[#allocation3 + $0x8] sm:$0xff] %vm552_vm2, %v1231_v3  ;;  %1310 = vst.msk [vmem:[%s1934_s23 + $0x8] sm:$0xff] %vm552_vm2, %v1231_v3 }
 0x364   : > { %v1233_v13 = vpop.permute.xlu0 %1232 }
 0x365   : > { %1254 = vst.msk [vmem:[#allocation3 + $0x10] sm:$0xff] %vm552_vm2, %v1233_v13  ;;  %1311 = vst.msk [vmem:[%s1934_s23 + $0x10] sm:$0xff] %vm552_vm2, %v1233_v13 }
 0x366   : > { %v1235_v15 = vpop.permute.xlu1 %1234 }
 0x367   : > { %1255 = vst.msk [vmem:[#allocation3 + $0x18] sm:$0xff] %vm552_vm2, %v1235_v15  ;;  %1312 = vst.msk [vmem:[%s1934_s23 + $0x18] sm:$0xff] %vm552_vm2, %v1235_v15 }
 0x368   : > { %v1237_v18 = vpop.permute.xlu0 %1236 }
 0x369   : > { %1256 = vst.msk [vmem:[#allocation3 + $0x20] sm:$0xff] %vm552_vm2, %v1237_v18  ;;  %1313 = vst.msk [vmem:[%s1934_s23 + $0x20] sm:$0xff] %vm552_vm2, %v1237_v18 }
 0x36a   : > { %v1239_v20 = vpop.permute.xlu1 %1238 }
 0x36b   : > { %1257 = vst.msk [vmem:[#allocation3 + $0x28] sm:$0xff] %vm552_vm2, %v1239_v20  ;;  %1314 = vst.msk [vmem:[%s1934_s23 + $0x28] sm:$0xff] %vm552_vm2, %v1239_v20 }
 0x36c   : > { %v1241_v21 = vpop.permute.xlu0 %1240 }
 0x36d   : > { %1258 = vst.msk [vmem:[#allocation3 + $0x30] sm:$0xff] %vm552_vm2, %v1241_v21  ;;  %1315 = vst.msk [vmem:[%s1934_s23 + $0x30] sm:$0xff] %vm552_vm2, %v1241_v21 }
 0x36e   : > { %v1243_v22 = vpop.permute.xlu1 %1242 }
 0x36f   : > { %1259 = vst.msk [vmem:[#allocation3 + $0x38] sm:$0xff] %vm552_vm2, %v1243_v22  ;;  %1316 = vst.msk [vmem:[%s1934_s23 + $0x38] sm:$0xff] %vm552_vm2, %v1243_v22 }
 0x370   : > { %1723 = shalt.err (!%p1720_p8)
}
 0x371   : > { %s1724_s23 = scalar_lea.hbm %s2380_s26, 1024  ;;  %s1728_s13 = scalar_lea.hbm %s2470_s5, 2048 }
 0x372   : > { %p1725_p10 = scmp.ne.s32.totalorder %s2380_s26, %s1724_s23  ;;  %p1729_p13 = scmp.lt.u32.totalorder %s2380_s26, %s2470_s5 }
 0x373   : > { %p1730_p0 = scmp.lt.u32.totalorder %s1728_s13, %s1724_s23  ;;  %p1732_p2 = scmp.lt.u32.totalorder %s1724_s23, %s2380_s26 }
 0x374   : > { %p1726_p11 = pnand %p1725_p10, %p1897_p3 }
 0x375   : > { %p1731_p1 = por %p1730_p0, %p1729_p13 }
 0x376   : > { %p1727_p12 = pneg %p1726_p11 }
 0x377   : > { %p1733_p4 = por %p1732_p2, %p1731_p1 }
 0x379   : > { %p1734_p5 = pnand %p1733_p4, %p1727_p12 }
 0x37b   : > { %1737 = shalt.err (!%p1734_p5)
}
 0x37c   : > { %s1816_s21 = smov 128   ;;  %s1817_s28 = smov 8  }
 0x37d   : > { %1548 = dma.vmem_to_hbm [thread:$0]  (%p1897_p3), %s2382_s29, 1024, %s2380_s26, %s2389_s22, %s1816_s21, %s1816_s21, %s1817_s28   ;;  %v1269_v23 = vpop.permute.xlu0 %1268 }
 0x37e   : > { %1293 = vst.msk [vmem:[#allocation2 + $0x11] sm:$0xff] %vm552_vm2, %v1269_v23  ;;  %1301 = vst.msk [vmem:[%s1932_s24] sm:$0xff] %vm552_vm2, %v1269_v23 }
 0x37f   : > { %v1271_v24 = vpop.permute.xlu1 %1270 }
 0x380   : > { %1294 = vst.msk [vmem:[#allocation2 + $0x21] sm:$0xff] %vm552_vm2, %v1271_v24  ;;  %1302 = vst.msk [vmem:[%s1932_s24 + $0x8] sm:$0xff] %vm552_vm2, %v1271_v24 }
 0x399   : > { %v1273_v25 = vpop.permute.xlu0 %1272 }
 0x39a   : > { %1295 = vst.msk [vmem:[#allocation2 + $0x31] sm:$0xff] %vm552_vm2, %v1273_v25  ;;  %1303 = vst.msk [vmem:[%s1932_s24 + $0x10] sm:$0xff] %vm552_vm2, %v1273_v25 }
 0x39b   : > { %v1275_v26 = vpop.permute.xlu1 %1274 }
 0x39c   : > { %1296 = vst.msk [vmem:[#allocation2 + $0x41] sm:$0xff] %vm552_vm2, %v1275_v26  ;;  %1304 = vst.msk [vmem:[%s1932_s24 + $0x18] sm:$0xff] %vm552_vm2, %v1275_v26 }
 0x3b5   : > { %v1277_v27 = vpop.permute.xlu0 %1276 }
 0x3b6   : > { %1297 = vst.msk [vmem:[#allocation2 + $0x51] sm:$0xff] %vm552_vm2, %v1277_v27  ;;  %1305 = vst.msk [vmem:[%s1932_s24 + $0x20] sm:$0xff] %vm552_vm2, %v1277_v27 }
 0x3b7   : > { %v1279_v36 = vpop.permute.xlu1 %1278 }
 0x3b8   : > { %1298 = vst.msk [vmem:[#allocation2 + $0x61] sm:$0xff] %vm552_vm2, %v1279_v36  ;;  %1306 = vst.msk [vmem:[%s1932_s24 + $0x28] sm:$0xff] %vm552_vm2, %v1279_v36 }
 0x3d1   : > { %v1281_v29 = vpop.permute.xlu0 %1280 }
 0x3d2   : > { %1299 = vst.msk [vmem:[#allocation2 + $0x71] sm:$0xff] %vm552_vm2, %v1281_v29  ;;  %1307 = vst.msk [vmem:[%s1932_s24 + $0x30] sm:$0xff] %vm552_vm2, %v1281_v29 }
 0x3d3   : > { %v1283_v30 = vpop.permute.xlu1 %1282 }
 0x3d4   : > { %1300 = vst.msk [vmem:[#allocation2 + $0x81] sm:$0xff] %vm552_vm2, %v1283_v30  ;;  %1308 = vst.msk [vmem:[%s1932_s24 + $0x38] sm:$0xff] %vm552_vm2, %v1283_v30 }
 0x3d5 PF: > { %p1554_p3 = scmp.ge.s32.totalorder %s1804_s25, 2  ;;  %s1370_s30 = sand.u32 1, %s1776_s18  }
 0x3d6   : > { %s1371_s29 = scalar_lea.sflag [#allocation5], %s1370_s30 }
 0x3d7   : > { %p1551_p6 = pnand %p1554_p3, %p1907_p9 }
 0x3d9   : > { %1771 = dma.done.wait (!%p1551_p6), %s1371_s29, 1024  }
 0x3da   : > { %1773 = vsyncadd (!%p1551_p6), %s1371_s29, 4294966272  ;;  %s19_s25 = sadd.s32 1, %s1804_s25   ;;  %s2480_s21 = sld [smem:[#allocation7_spill]] }
 0x3db   : > { %p16_p7 = scmp.ge.s32.totalorder %s19_s25, 18   ;;  %s2481_s22 = sld [smem:[#allocation8_spill]] }
 0x3dc   : > { %s2482_s23 = sld [smem:[#allocation9_spill]]  ;;  %s2483_s24 = sld [smem:[#allocation10_spill]] }
 0x3dd   : > { %s2484_s18 = smov %s1780_s19  ;;  %s2485_s19 = smov %s1784_s20 }
 0x3de   : > { %s2486_s20 = smov %s1915_s9  ;;  %18 = sbr.rel (!%p16_p7) target bundleno = 5 (0x5), region = 88 }
 0x3e5   :  { %1376 = vsyncpa [#allocation5], 1 }
 0x3e6   :  { %1378 = vsyncpa [#allocation5 + $0x1], 1 }

// kernel: _lambda_.3
= control target key start
LH: loop header
LB: loop body
LE: loop exit
PB: predicated region body
PF: predicated region fallthrough
CT: control target
= control target key end

     0   :  { %11 = vsyncpa [#allocation5], 0  ;;  %s2834_s0 = inlined_call_operand.vmem [shape: bf16[2,8,64,144], index: 0, kind: input, shape index: {}]   ;;  %s2835_s1 = inlined_call_operand.vmem [shape: bf16[144,128], index: 1, kind: input, shape index: {}]   ;;  %s2836_s2 = inlined_call_operand.vmem [shape: bf16[288,128], index: 2, kind: input, shape index: {}]   ;;  %s2837_s3 = inlined_call_operand.vmem [shape: f32[1,128], index: 3, kind: input, shape index: {}]   ;;  %s2838_s4 = inlined_call_operand.vmem [shape: f32[2,8,64,32], index: 4, kind: output, shape index: {0}]   ;;  %s2839_s5 = inlined_call_operand.hbm [shape: f32[2,64,32], index: 5, kind: output, shape index: {1}]  }
   0x1   :  { %13 = vsyncpa [#allocation5 + $0x1], 0  ;;  %s2119_s18 = smov 0   ;;  %s2121_s19 = smov 0  }
   0x2   :  { %s2123_s20 = smov 0   ;;  %s2125_s21 = smov 0  }
   0x3   :  { %s2127_s22 = smov 0   ;;  %s2129_s23 = smov 0  }
   0x4   :  { %s2131_s24 = smov 0   ;;  %s2133_s25 = smov 0  }
   0x5 LB: > { %2845 = sst [smem:[#allocation7_spill]] %s2059_s20  ;;  %s1663_s26 = sadd.s32 4294967295, %s2079_s25   ;;  %s2079_s25 = sphi %s2133_s25, %s19_s25   ;;  %s2075_s24 = sphi %s2131_s24, %s2859_s24   ;;  %s2071_s23 = sphi %s2129_s23, %s2862_s23   ;;  %s2067_s22 = sphi %s2127_s22, %s2857_s22   ;;  %s2063_s21 = sphi %s2125_s21, %s2856_s21   ;;  %s2059_s20 = sphi %s2123_s20, %s2855_s20   ;;  %s2055_s19 = sphi %s2121_s19, %s2861_s19   ;;  %s2051_s18 = sphi %s2119_s18, %s2860_s18  }
   0x6   : > { %2846 = sst [smem:[#allocation8_spill]] %s2071_s23  ;;  %s1664_s27 = sadd.s32 4294967294, %s2079_s25  }
   0x7   : > { %2847 = sst [smem:[#allocation9_spill]] %s2075_s24  ;;  %s28_s28 = sadd.s32 1, %s2071_s23 }
   0x8   : > { %p29_p0 = scmp.ge.s32.totalorder %s28_s28, 8  ;;  %s31_s29 = sadd.s32 1, %s2075_s24 }
   0x9   : > { %p167_p1 = scmp.ne.s32.totalorder %s2059_s20, %s2055_s19  ;;  %p168_p2 = scmp.eq.s32.totalorder %s1663_s26, 15 }
   0xa   : > { %s2864_s28 = smov (%p29_p0, %s28_s28), 0  ;;  %s2866_s29 = smov (!%p29_p0, %s31_s29), %s2075_s24 }
   0xb   : > { %2848 = sst [smem:[#allocation10_spill]] %s2864_s28  ;;  %p2168_p3 = por %p168_p2, %p167_p1 }
   0xc   : > { %p173_p4 = scmp.ne.s32.totalorder %s2055_s19, %s2051_s18  ;;  %p33_p5 = scmp.ge.s32.totalorder %s2866_s29, 2 }
   0xd   : > { %p174_p6 = scmp.eq.s32.totalorder %s1664_s27, 15  ;;  %p1667_p7 = scmp.ge.s32.totalorder %s2079_s25, 1 }
   0xe   : > { %p213_p8 = scmp.lt.s32.totalorder %s2079_s25, 17  ;;  %s2868_s29 = smov (%p33_p5, %s2866_s29), 0 }
   0xf   : > { %2850 = sst [smem:[#allocation11_spill]] %s2868_s29  ;;  %p2178_p9 = por %p174_p6, %p173_p4 }
  0x10   : > { %p214_p10 = pnand %p1667_p7, %p213_p8  ;;  %s154_s7 = ssub.s32 %s2075_s24, %s2868_s29 }
  0x11   : > { %s157_s8 = sadd.s32 1, %s2059_s20  ;;  %p155_p11 = scmp.eq.s32.totalorder %s154_s7, 0 }
  0x12   : > { %217 = sbr.rel (%p214_p10) target bundleno = 974 (0x3ce), region = 36  ;;  %s2843_s10 = sand.u32 (!%p214_p10), 1, %s2055_s19  }
  0x13   : > { %s2186_s9 = scalar_select %p155_p11, %s2059_s20, %s157_s8  }
  0x14   : > { %p254_p12 = scmp.lt.s32.totalorder (!%p214_p10), %s2067_s22, 1  ;;  %s1668_s11 = sshll.u32 (!%p214_p10), %s2843_s10, 6 }
  0x15   : > { %2852 = sst [smem:[#allocation12_spill]] %s2186_s9  ;;  %p256_p13 = scmp.lt.s32.totalorder (!%p214_p10), %s2063_s21, 7 }
  0x16   : > { %s2205_s20 = scalar_lea.vmem (!%p214_p10), [#allocation4], %s1668_s11  ;;  %p1675_p0 = scmp.ne.s32.totalorder (!%p214_p10), %s2063_s21, 0 }
  0x19   : > { %s255_s12 = scalar_select %p254_p12, %s2067_s22, 1 }
  0x1a   : > { %s257_s13 = scalar_select %p256_p13, %s2063_s21, 7 }
  0x1b   : > { %s1670_s14 = sshll.u32 %s255_s12, 7  ;;  %s1673_s15 = sshll.u32 %s255_s12, 6  ;;  %vm277_vm0 = vcmask (!%p1675_p0), 261120   ;;  %vm279_vm1 = vcmask (!%p1675_p0), 254976   ;;  %v2081_v0 = vmov (!%p1675_p0), 0.0  }
  0x1c   : > { %s1669_s16 = sshll.u32 %s257_s13, 4  ;;  %s1672_s17 = sshll.u32 %s257_s13, 3  ;;  %278 = vst.msk [vmem:[#allocation2] sm:$0xff] (!%p1675_p0), %vm277_vm0, %v2081_v0  ;;  %281 = vst.msk [vmem:[#allocation2 + $0x10] sm:$0xff] (!%p1675_p0), %vm277_vm0, %v2081_v0 }
  0x1d   : > { %s260_s26 = sadd.s32 %s1670_s14, %s1669_s16  ;;  %s269_s27 = sadd.s32 %s1673_s15, %s1672_s17  ;;  %283 = vst.msk [vmem:[#allocation2 + $0x20] sm:$0xff] (!%p1675_p0), %vm277_vm0, %v2081_v0  ;;  %285 = vst.msk [vmem:[#allocation2 + $0x30] sm:$0xff] (!%p1675_p0), %vm277_vm0, %v2081_v0 }
  0x1e   : > { %s1671_s7 = sshll.u32 %s260_s26, 2  ;;  %s1674_s8 = sshll.u32 %s269_s27, 3  ;;  %287 = vst.msk [vmem:[#allocation2 + $0x40] sm:$0xff] (!%p1675_p0), %vm277_vm0, %v2081_v0  ;;  %289 = vst.msk [vmem:[#allocation2 + $0x50] sm:$0xff] (!%p1675_p0), %vm277_vm0, %v2081_v0 }
  0x1f   : > { %s2198_s24 = scalar_lea.vmem %s2834_s0, %s1671_s7  ;;  %s2203_s10 = scalar_lea.vmem %s2838_s4, %s1674_s8  ;;  %291 = vst.msk [vmem:[#allocation2 + $0x60] sm:$0xff] (!%p1675_p0), %vm277_vm0, %v2081_v0  ;;  %293 = vst.msk [vmem:[#allocation2 + $0x70] sm:$0xff] (!%p1675_p0), %vm277_vm0, %v2081_v0 }
  0x20   : > { %276 = sbr.rel (%p1675_p0) target bundleno = 42 (0x2a), region = 40  ;;  %295 = vst.msk [vmem:[#allocation2 + $0x80] sm:$0xff] (!%p1675_p0), %vm277_vm0, %v2081_v0  ;;  %297 = vst.msk [vmem:[#allocation2 + $0x90] sm:$0xff] (!%p1675_p0), %vm277_vm0, %v2081_v0 }
  0x21   : > { %299 = vst.msk [vmem:[#allocation3] sm:$0xff] (!%p1675_p0), %vm277_vm0, %v2081_v0  ;;  %300 = vst.msk [vmem:[#allocation3 + $0x8] sm:$0xff] (!%p1675_p0), %vm277_vm0, %v2081_v0 }
  0x22   : > { %301 = vst.msk [vmem:[#allocation3 + $0x10] sm:$0xff] (!%p1675_p0), %vm277_vm0, %v2081_v0  ;;  %302 = vst.msk [vmem:[#allocation3 + $0x18] sm:$0xff] (!%p1675_p0), %vm277_vm0, %v2081_v0 }
  0x23   : > { %303 = vst.msk [vmem:[#allocation3 + $0x20] sm:$0xff] (!%p1675_p0), %vm277_vm0, %v2081_v0  ;;  %304 = vst.msk [vmem:[#allocation3 + $0x28] sm:$0xff] (!%p1675_p0), %vm277_vm0, %v2081_v0 }
  0x24   : > { %305 = vst.msk [vmem:[#allocation3 + $0x30] sm:$0xff] (!%p1675_p0), %vm277_vm0, %v2081_v0  ;;  %306 = vst.msk [vmem:[#allocation3 + $0x38] sm:$0xff] (!%p1675_p0), %vm277_vm0, %v2081_v0 }
  0x25   : > { %280 = vst.msk [vmem:[#allocation2 + $0x8] sm:$0x3] (!%p1675_p0), %vm279_vm1, %v2081_v0  ;;  %282 = vst.msk [vmem:[#allocation2 + $0x18] sm:$0x3] (!%p1675_p0), %vm279_vm1, %v2081_v0 }
  0x26   : > { %284 = vst.msk [vmem:[#allocation2 + $0x28] sm:$0x3] (!%p1675_p0), %vm279_vm1, %v2081_v0  ;;  %286 = vst.msk [vmem:[#allocation2 + $0x38] sm:$0x3] (!%p1675_p0), %vm279_vm1, %v2081_v0 }
  0x27   : > { %288 = vst.msk [vmem:[#allocation2 + $0x48] sm:$0x3] %vm279_vm1, %v2081_v0  ;;  %290 = vst.msk [vmem:[#allocation2 + $0x58] sm:$0x3] %vm279_vm1, %v2081_v0 }
  0x28   : > { %292 = vst.msk [vmem:[#allocation2 + $0x68] sm:$0x3] %vm279_vm1, %v2081_v0  ;;  %294 = vst.msk [vmem:[#allocation2 + $0x78] sm:$0x3] %vm279_vm1, %v2081_v0 }
  0x29   : > { %296 = vst.msk [vmem:[#allocation2 + $0x88] sm:$0x3] %vm279_vm1, %v2081_v0  ;;  %298 = vst.msk [vmem:[#allocation2 + $0x98] sm:$0x3] %vm279_vm1, %v2081_v0 }
  0x2a PF: > { %v339_v1 = vld [vmem:[#allocation2 + $0x30] sm:$0xff]  ;;  %v337_v6 = vld [vmem:[#allocation2 + $0x20] sm:$0xff]  ;;  %s2082_s21 = smov 64   ;;  %s2083_s23 = smov 32   ;;  %vm549_vm2 = vcmask 261120   ;;  %v1883_v37 = vld [vmem:[%s2836_s2 + $0x88] sm:$0xff]  }
  0x2b   : > { %v335_v3 = vld [vmem:[#allocation2 + $0x10] sm:$0xff]  ;;  %v333_v10 = vld [vmem:[#allocation2] sm:$0xff]  ;;  %v1887_v53 = vld [vmem:[%s2836_s2 + $0x48] sm:$0xff]   ;;  %v2084_v60 = vmov 0   ;;  %s2085_s14 = smov 96   ;;  %vm1092_vm3 = vcmask 130048  }
  0x2c   : > { %v341_v19 = vld [vmem:[#allocation2 + $0x40] sm:$0xff]  ;;  %v343_v24 = vld [vmem:[#allocation2 + $0x50] sm:$0xff]  ;;  %v1888_v58 = vld [vmem:[%s2836_s2 + $0x8] sm:$0xff]   ;;  %vm566_vm4 = vcmask 523264   ;;  %vm583_vm5 = vcmask 785408   ;;  %s2086_s15 = smov [#allocation4]  }
  0x2d   : > { %v345_v27 = vld [vmem:[#allocation2 + $0x60] sm:$0xff]  ;;  %v347_v33 = vld [vmem:[#allocation2 + $0x70] sm:$0xff]  ;;  %v1889_v63 = vld [vmem:[%s2835_s1 + $0x8] sm:$0xff]   ;;  %s1989_s16 = sshll.u32 %s2086_s15, 4  ;;  %s1990_s16 = int_to_ptr.vmem [resolvable:$false] %s1989_s16 }
  0x2e   : > { %v1882_v34 = vld [vmem:[%s2836_s2 + $0x80] sm:$0xff]   ;;  %v351_v56 = vld [vmem:[#allocation2 + $0x90] sm:$0xff]  ;;  %s1991_s17 = scalar_lea.vmem %s1990_s16, 2048 }
  0x2f   : > { %v336_v5 = vld [vmem:[#allocation2 + $0x18] sm:$0x3]  ;;  %v334_v11 = vld [vmem:[#allocation2 + $0x8] sm:$0x3]  ;;  %1792 = vmatprep.subr.bf16.mxu1 %v1882_v34  ;;  %v1884_v42 = vld [vmem:[%s2836_s2 + $0x40] sm:$0xff]  }
  0x30   : > { %v340_v2 = vld [vmem:[#allocation2 + $0x38] sm:$0x3]  ;;  %v338_v7 = vld [vmem:[#allocation2 + $0x28] sm:$0x3]  ;;  %v2238_v8 = vpack.c.bf16 %v336_v5, %v335_v3  ;;  %v2244_v12 = vpack.c.bf16 %v334_v11, %v333_v10  ;;  %1793 = vmatpush3.bf16.msra.mxu1 %v1882_v34  ;;  %v1885_v44 = vld [vmem:[%s2836_s2] sm:$0xff]   ;;  %1746 = vmatprep.subr.bf16.mxu0 %v1884_v42 }
  0x31   : > { %v2236_v4 = vpack.c.bf16 %v340_v2, %v339_v1  ;;  %v2240_v9 = vpack.c.bf16 %v338_v7, %v337_v6  ;;  %v342_v20 = vld [vmem:[#allocation2 + $0x48] sm:$0x3]  ;;  %v344_v25 = vld [vmem:[#allocation2 + $0x58] sm:$0x3]  ;;  %1794 = vmatprep.subr.bf16.mxu1 %v1883_v37  ;;  %v349_v50 = vld [vmem:[#allocation2 + $0x80] sm:$0xff]  ;;  %1747 = vmatpush3.bf16.msra.mxu0 %v1885_v44 }
  0x32   : > { %v444_v13 = vrot.slane %v2238_v8, 1  ;;  %v373_v14 = vshll.u32 %v2238_v8, 16  ;;  %v364_v16 = vshrl.u32 %v2244_v12, 16  ;;  %v366_v17 = vshll.u32 %v2244_v12, 16  ;;  %v346_v28 = vld [vmem:[#allocation2 + $0x68] sm:$0x3]  ;;  %1748 = vmatprep.subr.bf16.mxu0 %v1887_v53 }
  0x33   : > { %511 = vrot.lane.b32.xlu1 %v2236_v4, %s2082_s21  ;;  %v2249_v15 = vrot.slane %v2240_v9, 1  ;;  %v2254_v18 = vrot.slane %v2236_v4, 1  ;;  %v371_v22 = vshrl.u32 %v2238_v8, 16  ;;  %v385_v30 = vshrl.u32 %v2236_v4, 16  ;;  %v348_v36 = vld [vmem:[#allocation2 + $0x78] sm:$0x3] }
  0x34   : > { %492 = vrot.lane.b32.xlu0 %v444_v13, %s2083_s23  ;;  %v368_v21 = vrot.slane %v366_v17, 1  ;;  %v375_v23 = vrot.slane %v373_v14, 1  ;;  %v387_v31 = vshll.u32 %v2236_v4, 16  ;;  %v2264_v32 = vpack.c.bf16 %v342_v20, %v341_v19  ;;  %v350_v51 = vld [vmem:[#allocation2 + $0x88] sm:$0x3]  ;;  %1795 = vmatpush3.bf16.msra.mxu1 %v1883_v37  ;;  %v1886_v59 = vld [vmem:[%s2835_s1] sm:$0xff]  }
  0x35   : > { %v1678_v26 = vcombine.low %v2249_v15, %v2254_v18  ;;  %v380_v35 = vshll.u32 %v2240_v9, 16  ;;  %v443_v39 = vrot.slane %v2244_v12, 1  ;;  %v2280_v40 = vpack.c.bf16 %v344_v25, %v343_v24  ;;  %v352_v52 = vld [vmem:[#allocation2 + $0x98] sm:$0x3]  ;;  %1105 = vmatprep.subr.bf16.mxu1 %v2084_v60  ;;  %1749 = vmatpush3.bf16.msra.mxu0 %v1888_v58  ;;  %v1890_v0 = vld [vmem:[%s2836_s2 + $0x50] sm:$0xff]   ;;  %v1897_v17 = vld [vmem:[%s2836_s2 + $0x20] sm:$0xff]  }
  0x36   : > { %v369_v29 = vor.u32 %v368_v21, %v364_v16  ;;  %v2277_v38 = vor.u32 %v375_v23, %v371_v22  ;;  %v2282_v41 = vpack.c.bf16 %v346_v28, %v345_v27  ;;  %v378_v43 = vshrl.u32 %v2240_v9, 16  ;;  %1750 = vmatprep.subr.bf16.mxu0 %v1890_v0  ;;  %v1891_v5 = vld [vmem:[%s2836_s2 + $0x10] sm:$0xff]   ;;  %v1893_v7 = vld [vmem:[%s2836_s2 + $0x58] sm:$0xff]   ;;  %v1896_v16 = vld [vmem:[%s2836_s2 + $0x60] sm:$0xff]  }
  0x37   : > { %1796 = vmatprep.mubr.msk.bf16.mxu1 %vm549_vm2, %v1678_v26  ;;  %v389_v45 = vrot.slane %v387_v31, 1  ;;  %v2292_v46 = vrot.slane %v2264_v32, 1  ;;  %v2295_v47 = vrot.slane %v2280_v40, 1  ;;  %v2297_v48 = vpack.c.bf16 %v348_v36, %v347_v33  ;;  %v1894_v11 = vld [vmem:[%s2836_s2 + $0x18] sm:$0xff]   ;;  %v1899_v20 = vld [vmem:[%s2836_s2 + $0x68] sm:$0xff]   ;;  %v1902_v22 = vld [vmem:[%s2836_s2 + $0x70] sm:$0xff]  }
  0x38   : > { %494 = vrot.lane.b32.xlu0 %v2249_v15, %s2083_s23  ;;  %419 = vrot.lane.b32.xlu1 %v369_v29, %s2083_s23  ;;  %v382_v49 = vrot.slane %v380_v35, 1  ;;  %v2307_v54 = vrot.slane %v2282_v41, 1  ;;  %v2337_v2 = vpack.c.bf16 %v350_v51, %v349_v50  ;;  %v2339_v3 = vpack.c.bf16 %v352_v52, %v351_v56  ;;  %v1895_v19 = vld [vmem:[%s2835_s1 + $0x18] sm:$0xff]   ;;  %v1900_v21 = vld [vmem:[%s2836_s2 + $0x28] sm:$0xff]  }
  0x39   : > { %v2310_v55 = vrot.slane %v2297_v48, 1  ;;  %v1681_v57 = vcombine.low %v2292_v46, %v2295_v47  ;;  %v2335_v1 = vor.u32 %v389_v45, %v385_v30  ;;  %1751 = vmatpush3.bf16.msra.mxu0 %v1891_v5  ;;  %v1898_v23 = vld [vmem:[%s2835_s1 + $0x20] sm:$0xff]   ;;  %v394_v24 = vshll.u32 %v2264_v32, 16  ;;  %v1903_v25 = vld [vmem:[%s2836_s2 + $0x30] sm:$0xff]   ;;  %v1905_v27 = vld [vmem:[%s2836_s2 + $0x78] sm:$0xff]  }
  0x3a   : > { %v2324_v62 = vor.u32 %v382_v49, %v378_v43  ;;  %v548_v6 = vrot.slane %v2339_v3, 1  ;;  %v491_v10 = vrot.slane %v2337_v2, 1  ;;  %1752 = vmatprep.subr.bf16.mxu0 %v1893_v7  ;;  %v401_v26 = vshll.u32 %v2280_v40, 16  ;;  %v1901_v28 = vld [vmem:[%s2835_s1 + $0x28] sm:$0xff]   ;;  %v1904_v31 = vld [vmem:[%s2835_s1 + $0x30] sm:$0xff]   ;;  %v1906_v33 = vld [vmem:[%s2836_s2 + $0x38] sm:$0xff]  }
  0x3b   : > { %v1684_v61 = vcombine.low %v2307_v54, %v2310_v55  ;;  %1797 = vmatmul.mubr.msk.bf16.vlgmr.msra.gmra.mrb[0].mxu1 %vm549_vm2, %v1681_v57  ;;  %v392_v29 = vshrl.u32 %v2264_v32, 16  ;;  %v396_v30 = vrot.slane %v394_v24, 1  ;;  %v399_v34 = vshrl.u32 %v2280_v40, 16  ;;  %v1911_v36 = vld [vmem:[%s2198_s24 + $0x4] ss:$8 sps:$4 sm:$0xff]   ;;  %v1907_v42 = vld [vmem:[%s2835_s1 + $0x38] sm:$0xff]  }
  0x3c   : > { %509 = vrot.lane.b32.xlu0 %v2240_v9, %s2082_s21  ;;  %421 = vrot.lane.b32.xlu1 %v2277_v38, %s2083_s23  ;;  %v1687_v14 = vcombine.low %v491_v10, %v548_v6  ;;  %v403_v35 = vrot.slane %v401_v26, 1  ;;  %v1912_v43 = vld [vmem:[%s2198_s24 + $0x14] ss:$8 sps:$4 sm:$0xff]   ;;  %v408_v44 = vshll.u32 %v2282_v41, 16  ;;  %v415_v45 = vshll.u32 %v2297_v48, 16 }
  0x3d   : > { %1106 = vmatpush1.bf16.msra.mxu1 %v1886_v59  ;;  %1800 = vmatprep.mubr.msk.bf16.mxu1 %vm549_vm2, %v1684_v61  ;;  %v2430_v37 = vor.u32 %v396_v30, %v392_v29  ;;  %v1914_v49 = vld [vmem:[%s2198_s24 + $0x10] ss:$8 sps:$4 sm:$0xff]   ;;  %v406_v50 = vshrl.u32 %v2282_v41, 16  ;;  %v413_v52 = vshrl.u32 %v2297_v48, 16  ;;  %v1915_v58 = vld [vmem:[%s2198_s24 + $0x24] ss:$8 sps:$4 sm:$0xff]  }
  0x3e   : > { %1107 = vmatprep.subr.bf16.mxu1 %v2084_v60  ;;  %1753 = vmatpush3.bf16.msra.mxu0 %v1894_v11  ;;  %v410_v51 = vrot.slane %v408_v44, 1  ;;  %v417_v53 = vrot.slane %v415_v45, 1  ;;  %v1917_v59 = vld [vmem:[%s2198_s24 + $0x20] ss:$8 sps:$4 sm:$0xff]   ;;  %v1918_v5 = vld [vmem:[%s2198_s24 + $0x34] ss:$8 sps:$4 sm:$0xff]  }
  0x3f   : > { %1754 = vmatprep.subr.bf16.mxu0 %v1896_v16  ;;  %v1920_v6 = vld [vmem:[%s2198_s24 + $0x30] ss:$8 sps:$4 sm:$0xff]  }
  0x40   : > { %451 = vrot.lane.b32.xlu0 %v443_v39, %s2082_s21  ;;  %453 = vrot.lane.b32.xlu1 %v444_v13, %s2082_s21  ;;  %v1892_v13 = vld [vmem:[%s2835_s1 + $0x10] sm:$0xff]   ;;  %v2434_v39 = vor.u32 %v403_v35, %v399_v34  ;;  %v2474_v56 = vor.u32 %v410_v51, %v406_v50  ;;  %v2478_v57 = vor.u32 %v417_v53, %v413_v52 }
  0x41   : > { %1108 = vmatpush1.bf16.msra.mxu1 %v1889_v63  ;;  %v526_v63 = vshrl.u32 %v2339_v3, 16 }
  0x42   : > { %1109 = vmatprep.subr.bf16.mxu1 %v2084_v60  ;;  %1755 = vmatpush3.bf16.msra.mxu0 %v1897_v17 }
  0x43   : > { %1801 = vmatmul.mubr.msk.bf16.gmra.mrb[4].mxu1 %vm549_vm2, %v1687_v14  ;;  %1756 = vmatprep.subr.bf16.mxu0 %v1899_v20 }
  0x44   : > { %532 = vrot.lane.b32.xlu0 %v2324_v62, %s2085_s14  ;;  %534 = vrot.lane.b32.xlu1 %v2335_v1, %s2085_s14 }
  0x45   : > { %1110 = vmatpush1.bf16.msra.mxu1 %v1892_v13  ;;  %1727 = vmatprep.mubr.msk.bf16.mxu1 %vm1092_vm3, %v1911_v36 }
  0x46   : > { %1111 = vmatprep.subr.bf16.mxu1 %v2084_v60  ;;  %1757 = vmatpush3.bf16.msra.mxu0 %v1900_v21 }
  0x47   : > { %1758 = vmatprep.subr.bf16.mxu0 %v1902_v22 }
  0x48   : > { %468 = vrot.lane.b32.xlu0 %v2238_v8, %s2085_s14  ;;  %470 = vrot.lane.b32.xlu1 %v2240_v9, %s2085_s14 }
  0x49   : > { %1112 = vmatpush1.bf16.msra.mxu1 %v1895_v19 }
  0x4a   : > { %1113 = vmatprep.subr.bf16.mxu1 %v2084_v60  ;;  %1759 = vmatpush3.bf16.msra.mxu0 %v1903_v25 }
  0x4b   : > { %1760 = vmatprep.subr.bf16.mxu0 %v1905_v27 }
  0x4c   : > { %496 = vrot.lane.b32.xlu0 %v2254_v18, %s2083_s23  ;;  %498 = vrot.lane.b32.xlu1 %v2292_v46, %s2083_s23 }
  0x4d   : > { %1114 = vmatpush1.bf16.msra.mxu1 %v1898_v23 }
  0x4e   : > { %1115 = vmatprep.subr.bf16.mxu1 %v2084_v60  ;;  %1761 = vmatpush3.bf16.msra.mxu0 %v1906_v33 }
  0x50   : > { %423 = vrot.lane.b32.xlu0 %v2324_v62, %s2083_s23  ;;  %425 = vrot.lane.b32.xlu1 %v2335_v1, %s2083_s23 }
  0x51   : > { %1116 = vmatpush1.bf16.msra.mxu1 %v1901_v28 }
  0x52   : > { %1117 = vmatprep.subr.bf16.mxu1 %v2084_v60 }
  0x54   : > { %513 = vrot.lane.b32.xlu0 %v2264_v32, %s2082_s21  ;;  %515 = vrot.lane.b32.xlu1 %v2280_v40, %s2082_s21 }
  0x55   : > { %1118 = vmatpush1.bf16.msra.mxu1 %v1904_v31 }
  0x56   : > { %1119 = vmatprep.subr.bf16.mxu1 %v2084_v60 }
  0x58   : > { %455 = vrot.lane.b32.xlu0 %v2249_v15, %s2082_s21  ;;  %457 = vrot.lane.b32.xlu1 %v2254_v18, %s2082_s21  ;;  %v1908_v15 = vld [vmem:[%s2835_s1 + $0x40] sm:$0xff]  }
  0x59   : > { %1120 = vmatpush1.bf16.msra.mxu1 %v1907_v42  ;;  %v1909_v18 = vld [vmem:[%s2198_s24] ss:$8 sps:$4 sm:$0xff]  }
  0x5a   : > { %1121 = vmatprep.subr.bf16.mxu1 %v2084_v60  ;;  %v485_v60 = vshrl.u32 %v2337_v2, 16 }
  0x5c   : > { %536 = vrot.lane.b32.xlu0 %v2430_v37, %s2085_s14  ;;  %538 = vrot.lane.b32.xlu1 %v2434_v39, %s2085_s14 }
  0x5d   : > { %1122 = vmatpush1.bf16.msra.mxu1 %v1908_v15 }
  0x60   : > { %472 = vrot.lane.b32.xlu0 %v2236_v4, %s2085_s14  ;;  %474 = vrot.lane.b32.xlu1 %v2264_v32, %s2085_s14 }
  0x61   : > { %1138 = vmatmul.mubr.bf16.vlgmr.msra.gmra.mrb[8].mxu1 %v1909_v18 }
  0x62   : > { %1728 = vmatprep.mubr.msk.bf16.mxu1 %vm1092_vm3, %v1912_v43 }
  0x64   : > { %500 = vrot.lane.b32.xlu0 %v2295_v47, %s2083_s23  ;;  %502 = vrot.lane.b32.xlu1 %v2307_v54, %s2083_s23 }
  0x68   : > { %427 = vrot.lane.b32.xlu0 %v2430_v37, %s2083_s23  ;;  %429 = vrot.lane.b32.xlu1 %v2434_v39, %s2083_s23 }
  0x69   : > { %1146 = vmatmul.mubr.bf16.gmra.mrb[12].mxu1 %v1914_v49 }
  0x6a   : > { %1729 = vmatprep.mubr.msk.bf16.mxu1 %vm1092_vm3, %v1915_v58 }
  0x6c   : > { %517 = vrot.lane.b32.xlu0 %v2282_v41, %s2082_s21  ;;  %519 = vrot.lane.b32.xlu1 %v2297_v48, %s2082_s21 }
  0x70   : > { %459 = vrot.lane.b32.xlu0 %v2292_v46, %s2082_s21  ;;  %461 = vrot.lane.b32.xlu1 %v2295_v47, %s2082_s21  ;;  %v487_v46 = vshll.u32 %v2337_v2, 16  ;;  %v528_v47 = vshll.u32 %v2339_v3, 16 }
  0x71   : > { %1154 = vmatmul.mubr.bf16.gmra.mrb[16].mxu1 %v1917_v59 }
  0x72   : > { %v489_v61 = vrot.slane %v487_v46, 1  ;;  %v530_v0 = vrot.slane %v528_v47, 1  ;;  %1730 = vmatprep.mubr.msk.bf16.mxu1 %vm1092_vm3, %v1918_v5 }
  0x74   : > { %540 = vrot.lane.b32.xlu0 %v2474_v56, %s2085_s14  ;;  %542 = vrot.lane.b32.xlu1 %v2478_v57, %s2085_s14  ;;  %v2512_v7 = vor.u32 %v489_v61, %v485_v60 }
  0x78   : > { %476 = vrot.lane.b32.xlu0 %v2280_v40, %s2085_s14  ;;  %478 = vrot.lane.b32.xlu1 %v2282_v41, %s2085_s14 }
  0x79   : > { %1162 = vmatmul.mubr.bf16.gmra.mrb[20].mxu1 %v1920_v6 }
  0x7c   : > { %504 = vrot.lane.b32.xlu0 %v2310_v55, %s2083_s23  ;;  %506 = vrot.lane.b32.xlu1 %v491_v10, %s2083_s23  ;;  %v531_v10 = vor.u32 %v530_v0, %v526_v63 }
  0x80   : > { %431 = vrot.lane.b32.xlu0 %v2474_v56, %s2083_s23  ;;  %433 = vrot.lane.b32.xlu1 %v2478_v57, %s2083_s23 }
  0x84   : > { %521 = vrot.lane.b32.xlu0 %v2337_v2, %s2082_s21  ;;  %523 = vrot.lane.b32.xlu1 %v2339_v3, %s2082_s21 }
  0x88   : > { %463 = vrot.lane.b32.xlu0 %v2307_v54, %s2082_s21  ;;  %465 = vrot.lane.b32.xlu1 %v2310_v55, %s2082_s21 }
  0x8c   : > { %544 = vrot.lane.b32.xlu0 %v2512_v7, %s2085_s14  ;;  %546 = vrot.lane.b32.xlu1 %v531_v10, %s2085_s14 }
  0x90   : > { %480 = vrot.lane.b32.xlu0 %v2297_v48, %s2085_s14  ;;  %482 = vrot.lane.b32.xlu1 %v2337_v2, %s2085_s14 }
  0xa5   : > { %v512_v54 = vpop.permute.xlu1 %511 }
  0xa6   : > { %v493_v3 = vpop.permute.xlu0 %492 }
  0xa7   : > { %v602_v20 = vsel %vm549_vm2, %v2277_v38, %v493_v3 }
  0xaa   : > { %v495_v11 = vpop.permute.xlu0 %494  ;;  %v420_v13 = vpop.permute.xlu1 %419 }
  0xab   : > { %v605_v19 = vsel %vm549_vm2, %v2324_v62, %v495_v11  ;;  %v551_v26 = vsel %vm549_vm2, %v2244_v12, %v420_v13 }
  0xac   : > { %v627_v23 = vsel %vm566_vm4, %v605_v19, %v512_v54 }
  0xae   : > { %v510_v14 = vpop.permute.xlu0 %509  ;;  %v422_v16 = vpop.permute.xlu1 %421 }
  0xaf   : > { %v625_v21 = vsel %vm566_vm4, %v602_v20, %v510_v14  ;;  %v553_v62 = vsel %vm549_vm2, %v2238_v8, %v422_v16 }
  0xb2   : > { %v452_v55 = vpop.permute.xlu0 %451  ;;  %v454_v17 = vpop.permute.xlu1 %453 }
  0xb3   : > { %v568_v28 = vsel %vm566_vm4, %v551_v26, %v452_v55  ;;  %v570_v29 = vsel %vm566_vm4, %v553_v62, %v454_v17 }
  0xb6   : > { %v533_v22 = vpop.permute.xlu0 %532  ;;  %v535_v2 = vpop.permute.xlu1 %534 }
  0xb7   : > { %v641_v24 = vsel %vm583_vm5, %v625_v21, %v533_v22  ;;  %v643_v25 = vsel %vm583_vm5, %v627_v23, %v535_v2 }
  0xb8   : > { %v1677_v27 = vcombine.low %v641_v24, %v643_v25 }
  0xba   : > { %v469_v38 = vpop.permute.xlu0 %468  ;;  %904 = vmatprep.mubr.bf16.mxu0 %v1677_v27  ;;  %v471_v31 = vpop.permute.xlu1 %470 }
  0xbb   : > { %v585_v30 = vsel %vm583_vm5, %v568_v28, %v469_v38  ;;  %v587_v33 = vsel %vm583_vm5, %v570_v29, %v471_v31 }
  0xbc   : > { %v1676_v34 = vcombine.low %v585_v30, %v587_v33 }
  0xbe   : > { %v497_v35 = vpop.permute.xlu0 %496  ;;  %905 = vmatmul.mubr.bf16.vlgmr.msra.gmra.mrb[0].mxu0 %v1676_v34  ;;  %v499_v36 = vpop.permute.xlu1 %498 }
  0xbf   : > { %v608_v44 = vsel %vm549_vm2, %v2335_v1, %v497_v35  ;;  %v611_v45 = vsel %vm549_vm2, %v2430_v37, %v499_v36 }
  0xc2   : > { %v424_v12 = vpop.permute.xlu0 %423  ;;  %v426_v42 = vpop.permute.xlu1 %425 }
  0xc3   : > { %v555_v59 = vsel %vm549_vm2, %v2240_v9, %v424_v12  ;;  %v557_v1 = vsel %vm549_vm2, %v2236_v4, %v426_v42 }
  0xc6   : > { %v514_v15 = vpop.permute.xlu0 %513  ;;  %v516_v18 = vpop.permute.xlu1 %515 }
  0xc7   : > { %v629_v49 = vsel %vm566_vm4, %v608_v44, %v514_v15  ;;  %v631_v51 = vsel %vm566_vm4, %v611_v45, %v516_v18 }
  0xca   : > { %v456_v8 = vpop.permute.xlu0 %455  ;;  %v458_v43 = vpop.permute.xlu1 %457 }
  0xcb   : > { %v572_v47 = vsel %vm566_vm4, %v555_v59, %v456_v8  ;;  %v574_v60 = vsel %vm566_vm4, %v557_v1, %v458_v43 }
  0xce   : > { %v537_v50 = vpop.permute.xlu0 %536  ;;  %v539_v53 = vpop.permute.xlu1 %538 }
  0xcf   : > { %v645_v52 = vsel %vm583_vm5, %v629_v49, %v537_v50  ;;  %v647_v58 = vsel %vm583_vm5, %v631_v51, %v539_v53 }
  0xd0   : > { %v1680_v46 = vcombine.low %v645_v52, %v647_v58 }
  0xd2   : > { %v473_v37 = vpop.permute.xlu0 %472  ;;  %912 = vmatprep.mubr.bf16.mxu0 %v1680_v46  ;;  %v475_v63 = vpop.permute.xlu1 %474 }
  0xd3   : > { %v589_v61 = vsel %vm583_vm5, %v572_v47, %v473_v37  ;;  %v591_v0 = vsel %vm583_vm5, %v574_v60, %v475_v63 }
  0xd4   : > { %v1679_v5 = vcombine.low %v589_v61, %v591_v0 }
  0xd6   : > { %v501_v6 = vpop.permute.xlu0 %500  ;;  %913 = vmatmul.mubr.bf16.gmra.mrb[4].mxu0 %v1679_v5  ;;  %v503_v10 = vpop.permute.xlu1 %502 }
  0xd7   : > { %v614_v14 = vsel %vm549_vm2, %v2434_v39, %v501_v6  ;;  %v617_v16 = vsel %vm549_vm2, %v2474_v56, %v503_v10 }
  0xda   : > { %v428_v9 = vpop.permute.xlu0 %427  ;;  %v430_v54 = vpop.permute.xlu1 %429 }
  0xdb   : > { %v559_v2 = vsel %vm549_vm2, %v2264_v32, %v428_v9  ;;  %v561_v39 = vsel %vm549_vm2, %v2280_v40, %v430_v54 }
  0xde   : > { %v518_v3 = vpop.permute.xlu0 %517  ;;  %v520_v11 = vpop.permute.xlu1 %519 }
  0xdf   : > { %v633_v55 = vsel %vm566_vm4, %v614_v14, %v518_v3  ;;  %v635_v19 = vsel %vm566_vm4, %v617_v16, %v520_v11 }
  0xe2   : > { %v460_v4 = vpop.permute.xlu0 %459  ;;  %v462_v13 = vpop.permute.xlu1 %461 }
  0xe3   : > { %v576_v24 = vsel %vm566_vm4, %v559_v2, %v460_v4  ;;  %v578_v25 = vsel %vm566_vm4, %v561_v39, %v462_v13 }
  0xe6   : > { %v541_v17 = vpop.permute.xlu0 %540  ;;  %v543_v21 = vpop.permute.xlu1 %542 }
  0xe7   : > { %v649_v20 = vsel %vm583_vm5, %v633_v55, %v541_v17  ;;  %v651_v22 = vsel %vm583_vm5, %v635_v19, %v543_v21 }
  0xe8   : > { %v1683_v23 = vcombine.low %v649_v20, %v651_v22 }
  0xea   : > { %v477_v56 = vpop.permute.xlu0 %476  ;;  %920 = vmatprep.mubr.bf16.mxu0 %v1683_v23  ;;  %v479_v27 = vpop.permute.xlu1 %478 }
  0xeb   : > { %v593_v26 = vsel %vm583_vm5, %v576_v24, %v477_v56  ;;  %v595_v62 = vsel %vm583_vm5, %v578_v25, %v479_v27  ;;  %v1731_v24 = vld [vmem:[%s2837_s3] ss:$0 sm:$0xff] }
  0xec   : > { %v1682_v28 = vcombine.low %v593_v26, %v595_v62 }
  0xee   : > { %v505_v38 = vpop.permute.xlu0 %504  ;;  %921 = vmatmul.mubr.bf16.gmra.mrb[8].mxu0 %v1682_v28  ;;  %v507_v29 = vpop.permute.xlu1 %506 }
  0xef   : > { %v620_v35 = vsel %vm549_vm2, %v2478_v57, %v505_v38  ;;  %v623_v36 = vsel %vm549_vm2, %v2512_v7, %v507_v29 }
  0xf2   : > { %v432_v32 = vpop.permute.xlu0 %431  ;;  %v434_v30 = vpop.permute.xlu1 %433 }
  0xf3   : > { %v563_v44 = vsel %vm549_vm2, %v2282_v41, %v432_v32  ;;  %v565_v57 = vsel %vm549_vm2, %v2297_v48, %v434_v30 }
  0xf6   : > { %v522_v31 = vpop.permute.xlu0 %521  ;;  %v524_v33 = vpop.permute.xlu1 %523 }
  0xf7   : > { %v637_v12 = vsel %vm566_vm4, %v620_v35, %v522_v31  ;;  %v639_v15 = vsel %vm566_vm4, %v623_v36, %v524_v33 }
  0xfa   : > { %v464_v40 = vpop.permute.xlu0 %463  ;;  %v466_v34 = vpop.permute.xlu1 %465 }
  0xfb   : > { %v580_v49 = vsel %vm566_vm4, %v563_v44, %v464_v40  ;;  %v582_v50 = vsel %vm566_vm4, %v565_v57, %v466_v34 }
  0xfe   : > { %v545_v42 = vpop.permute.xlu0 %544  ;;  %v547_v8 = vpop.permute.xlu1 %546 }
  0xff   : > { %v653_v18 = vsel %vm583_vm5, %v637_v12, %v545_v42  ;;  %v655_v43 = vsel %vm583_vm5, %v639_v15, %v547_v8 }
 0x100   : > { %v1686_v45 = vcombine.low %v653_v18, %v655_v43 }
 0x102   : > { %v481_v7 = vpop.permute.xlu0 %480  ;;  %928 = vmatprep.mubr.bf16.mxu0 %v1686_v45  ;;  %v483_v52 = vpop.permute.xlu1 %482 }
 0x103   : > { %v597_v51 = vsel %vm583_vm5, %v580_v49, %v481_v7  ;;  %v599_v53 = vsel %vm583_vm5, %v582_v50, %v483_v52 }
 0x104   : > { %v1685_v58 = vcombine.low %v597_v51, %v599_v53 }
 0x106   : > { %929 = vmatmul.mubr.bf16.gmra.mrb[12].mxu0 %v1685_v58 }
 0x10e   : > { %v1798_v59 = vpop.f32.mrb[0].mxu1 }
 0x10f   : > { %v971_v46 = vpop.f32.mrb[1].mxu1 }
 0x110   : > { %v1799_v41 = vpop.f32.mrb[2].mxu1 }
 0x111   : > { %v974_v1 = vpop.f32.mrb[3].mxu1 }
 0x116   : > { %v2588_v47 = vpop.f32.mrb[4].mxu1 }
 0x117   : > { %v987_v48 = vpop.f32.mrb[5].mxu1 }
 0x118   : > { %v2590_v37 = vpop.f32.mrb[6].mxu1 }
 0x119   : > { %v990_v60 = vpop.f32.mrb[7].mxu1 }
 0x134   : > { %v1139_v61 = vpop.f32.mrb[8].mxu1 }
 0x135   : > { %v1141_v63 = vpop.f32.mrb[9].mxu1 }
 0x136   : > { %v1142_v0 = vpop.f32.mrb[10].mxu1 }
 0x137   : > { %v1144_v5 = vpop.f32.mrb[11].mxu1 }
 0x13c   : > { %v1147_v6 = vpop.f32.mrb[12].mxu1 }
 0x13d   : > { %v1149_v10 = vpop.f32.mrb[13].mxu1 }
 0x13e   : > { %v1150_v9 = vpop.f32.mrb[14].mxu1 }
 0x13f   : > { %v1152_v54 = vpop.f32.mrb[15].mxu1 }
 0x144   : > { %v1155_v3 = vpop.f32.mrb[16].mxu1 }
 0x145   : > { %v1157_v11 = vpop.f32.mrb[17].mxu1 }
 0x146   : > { %v1158_v4 = vpop.f32.mrb[18].mxu1 }
 0x147   : > { %v1160_v13 = vpop.f32.mrb[19].mxu1 }
 0x148   : > { %v1243_v13 = vld [vmem:[#allocation3 + $0x10] sm:$0xff] }
 0x14c   : > { %v2592_v14 = vpop.f32.mrb[20].mxu1 }
 0x14d   : > { %v1165_v16 = vpop.f32.mrb[21].mxu1 }
 0x14e   : > { %v2594_v55 = vpop.f32.mrb[22].mxu1  ;;  %v1245_v16 = vld [vmem:[#allocation3 + $0x20] sm:$0xff] }
 0x14f   : > { %v1168_v17 = vpop.f32.mrb[23].mxu1 }
 0x150   : > { %v1246_v17 = vld [vmem:[#allocation3 + $0x28] sm:$0xff] }
 0x191   : > { %v1762_v19 = vpop.f32.mrb[0].mxu0 }
 0x192   : > { %v1763_v20 = vpop.f32.mrb[1].mxu0 }
 0x193   : > { %v1764_v21 = vadd.f32 %v1763_v20, %v1762_v19  ;;  %v1765_v22 = vpop.f32.mrb[2].mxu0  ;;  %v1247_v19 = vld [vmem:[#allocation3 + $0x30] sm:$0xff] }
 0x194   : > { %v1766_v2 = vpop.f32.mrb[3].mxu0 }
 0x195   : > { %v1767_v23 = vadd.f32 %v1766_v2, %v1765_v22  ;;  %v972_v39 = vadd.f32 %v1764_v21, %v971_v46  ;;  %v1248_v21 = vld [vmem:[#allocation3 + $0x38] sm:$0xff] }
 0x197   : > { %v1140_v56 = vadd.f32 %v1139_v61, %v972_v39  ;;  %v975_v25 = vadd.f32 %v1767_v23, %v974_v1 }
 0x199   : > { %v2599_v26 = vadd.f32 %v1731_v24, %v1140_v56  ;;  %v1143_v27 = vadd.f32 %v1142_v0, %v975_v25 }
 0x19b   : > { %1921 = vtanh.f32 %v2599_v26  ;;  %v2602_v62 = vadd.f32 %v1731_v24, %v1143_v27 }
 0x19d   : > { %1923 = vtanh.f32 %v2602_v62  ;;  %v1733_v20 = vmul.f32 -1.442695, %v2602_v62 }
 0x1a5   : > { %v1922_v28 = vpop.eup %1921 }
 0x1a6   : > { %1297 = vrot.lane.b32.xlu0 %v1922_v28, %s2083_s23 }
 0x1a7   : > { %v1924_v38 = vpop.eup %1923 }
 0x1a8   : > { %1299 = vrot.lane.b32.xlu1 %v1924_v38, %s2083_s23 }
 0x1a9   : > { %v1768_v29 = vpop.f32.mrb[4].mxu0 }
 0x1aa   : > { %v1769_v32 = vpop.f32.mrb[5].mxu0 }
 0x1ab   : > { %v1770_v30 = vadd.f32 %v1769_v32, %v1768_v29  ;;  %v1771_v31 = vpop.f32.mrb[6].mxu0 }
 0x1ac   : > { %v1772_v33 = vpop.f32.mrb[7].mxu0 }
 0x1ad   : > { %v1773_v40 = vadd.f32 %v1772_v33, %v1771_v31  ;;  %v980_v34 = vadd.f32 %v1798_v59, %v1770_v30 }
 0x1af   : > { %v1148_v35 = vadd.f32 %v1147_v6, %v980_v34  ;;  %v983_v36 = vadd.f32 %v1799_v41, %v1773_v40 }
 0x1b1   : > { %v2607_v12 = vadd.f32 %v1731_v24, %v1148_v35  ;;  %v1151_v42 = vadd.f32 %v1150_v9, %v983_v36 }
 0x1b3   : > { %1925 = vtanh.f32 %v2607_v12  ;;  %v2610_v15 = vadd.f32 %v1731_v24, %v1151_v42 }
 0x1b5   : > { %1927 = vtanh.f32 %v2610_v15  ;;  %v1735_v56 = vmul.f32 -1.442695, %v2610_v15 }
 0x1bd   : > { %v1926_v18 = vpop.eup %1925 }
 0x1be   : > { %1301 = vrot.lane.b32.xlu0 %v1926_v18, %s2083_s23 }
 0x1bf   : > { %v1928_v8 = vpop.eup %1927 }
 0x1c0   : > { %1303 = vrot.lane.b32.xlu1 %v1928_v8, %s2083_s23 }
 0x1c1   : > { %v1774_v43 = vpop.f32.mrb[8].mxu0 }
 0x1c2   : > { %v1775_v44 = vpop.f32.mrb[9].mxu0 }
 0x1c3   : > { %v1776_v45 = vadd.f32 %v1775_v44, %v1774_v43  ;;  %v1777_v57 = vpop.f32.mrb[10].mxu0 }
 0x1c4   : > { %v1778_v49 = vpop.f32.mrb[11].mxu0 }
 0x1c5   : > { %v1779_v7 = vadd.f32 %v1778_v49, %v1777_v57  ;;  %v988_v50 = vadd.f32 %v1776_v45, %v987_v48 }
 0x1c7   : > { %v1156_v51 = vadd.f32 %v1155_v3, %v988_v50  ;;  %v991_v52 = vadd.f32 %v1779_v7, %v990_v60 }
 0x1c9   : > { %v2615_v53 = vadd.f32 %v1731_v24, %v1156_v51  ;;  %v1159_v58 = vadd.f32 %v1158_v4, %v991_v52  ;;  %v1241_v4 = vld [vmem:[#allocation3] sm:$0xff] }
 0x1cb   : > { %1929 = vtanh.f32 %v2615_v53  ;;  %v2618_v59 = vadd.f32 %v1731_v24, %v1159_v58  ;;  %v1736_v33 = vmul.f32 -1.442695, %v2615_v53 }
 0x1cd   : > { %1931 = vtanh.f32 %v2618_v59  ;;  %v1737_v40 = vmul.f32 -1.442695, %v2618_v59 }
 0x1d5   : > { %v1930_v46 = vpop.eup %1929 }
 0x1d6   : > { %1305 = vrot.lane.b32.xlu0 %v1930_v46, %s2083_s23 }
 0x1d7   : > { %v1932_v41 = vpop.eup %1931 }
 0x1d8   : > { %1307 = vrot.lane.b32.xlu1 %v1932_v41, %s2083_s23 }
 0x1d9   : > { %v1780_v1 = vpop.f32.mrb[12].mxu0 }
 0x1da   : > { %v1781_v61 = vpop.f32.mrb[13].mxu0 }
 0x1db   : > { %v1782_v48 = vadd.f32 %v1781_v61, %v1780_v1  ;;  %v1783_v63 = vpop.f32.mrb[14].mxu0 }
 0x1dc   : > { %v1784_v60 = vpop.f32.mrb[15].mxu0 }
 0x1dd   : > { %v996_v0 = vadd.f32 %v2588_v47, %v1782_v48  ;;  %v1785_v5 = vadd.f32 %v1784_v60, %v1783_v63 }
 0x1df   : > { %v1164_v6 = vadd.f32 %v2592_v14, %v996_v0  ;;  %v999_v10 = vadd.f32 %v2590_v37, %v1785_v5  ;;  %v1242_v37 = vld [vmem:[#allocation3 + $0x8] sm:$0xff]  ;;  %v1244_v14 = vld [vmem:[#allocation3 + $0x18] sm:$0xff] }
 0x1e1   : > { %v2626_v9 = vadd.f32 %v1731_v24, %v1164_v6  ;;  %v1167_v54 = vadd.f32 %v2594_v55, %v999_v10  ;;  %v1732_v55 = vmul.f32 -1.442695, %v2599_v26 }
 0x1e3   : > { %1933 = vtanh.f32 %v2626_v9  ;;  %v2630_v3 = vadd.f32 %v1731_v24, %v1167_v54  ;;  %v1734_v24 = vmul.f32 -1.442695, %v2607_v12  ;;  %v1738_v45 = vmul.f32 -1.442695, %v2626_v9 }
 0x1e5   : > { %1935 = vtanh.f32 %v2630_v3  ;;  %v1739_v57 = vmul.f32 -1.442695, %v2630_v3 }
 0x1e6   : > { %1937 = vpow2.f32 %v1732_v55 }
 0x1e7   : > { %1939 = vpow2.f32 %v1733_v20 }
 0x1ed   : > { %v1934_v11 = vpop.eup %1933 }
 0x1ee   : > { %1309 = vrot.lane.b32.xlu0 %v1934_v11, %s2083_s23 }
 0x1ef   : > { %v1936_v47 = vpop.eup %1935 }
 0x1f0   : > { %1311 = vrot.lane.b32.xlu1 %v1936_v47, %s2083_s23  ;;  %v1938_v22 = vpop.eup %1937 }
 0x1f1   : > { %v1940_v2 = vpop.eup %1939  ;;  %v1209_v23 = vadd.f32 1.0, %v1938_v22 }
 0x1f2   : > { %1257 = vrot.lane.b32.xlu0 %v1241_v4, %s2083_s23  ;;  %v1210_v39 = vadd.f32 1.0, %v1940_v2 }
 0x1f3   : > { %1941 = vrcp.f32 %v1209_v23 }
 0x1f4   : > { %1259 = vrot.lane.b32.xlu1 %v1242_v37, %s2083_s23  ;;  %1943 = vrcp.f32 %v1210_v39 }
 0x1f5   : > { %1945 = vpow2.f32 %v1734_v24 }
 0x1f6   : > { %1261 = vrot.lane.b32.xlu0 %v1243_v13, %s2083_s23  ;;  %1947 = vpow2.f32 %v1735_v56 }
 0x1f8   : > { %1263 = vrot.lane.b32.xlu1 %v1244_v14, %s2083_s23 }
 0x1fa   : > { %1265 = vrot.lane.b32.xlu0 %v1245_v16, %s2083_s23 }
 0x1fc   : > { %1267 = vrot.lane.b32.xlu1 %v1246_v17, %s2083_s23 }
 0x1fd   : > { %v2647_v25 = vpop.eup %1941 }
 0x1fe   : > { %1269 = vrot.lane.b32.xlu0 %v1247_v19, %s2083_s23  ;;  %v2650_v62 = vpop.eup %1943 }
 0x1ff   : > { %v1946_v29 = vpop.eup %1945 }
 0x200   : > { %1271 = vrot.lane.b32.xlu1 %v1248_v21, %s2083_s23  ;;  %v1948_v32 = vpop.eup %1947  ;;  %v1211_v30 = vadd.f32 1.0, %v1946_v29 }
 0x201   : > { %v1212_v31 = vadd.f32 1.0, %v1948_v32 }
 0x202   : > { %1949 = vrcp.f32 %v1211_v30 }
 0x203   : > { %1951 = vrcp.f32 %v1212_v31 }
 0x204   : > { %1953 = vpow2.f32 %v1736_v33 }
 0x205   : > { %1955 = vpow2.f32 %v1737_v40 }
 0x20c   : > { %v2657_v34 = vpop.eup %1949 }
 0x20d   : > { %v2660_v12 = vpop.eup %1951 }
 0x20e   : > { %v1954_v18 = vpop.eup %1953 }
 0x20f   : > { %v1956_v8 = vpop.eup %1955  ;;  %v1213_v43 = vadd.f32 1.0, %v1954_v18 }
 0x210   : > { %v1214_v44 = vadd.f32 1.0, %v1956_v8 }
 0x211   : > { %1957 = vrcp.f32 %v1213_v43 }
 0x212   : > { %1959 = vrcp.f32 %v1214_v44 }
 0x213   : > { %1961 = vpow2.f32 %v1738_v45 }
 0x214   : > { %1963 = vpow2.f32 %v1739_v57 }
 0x218   : > { %v1298_v26 = vpop.permute.xlu0 %1297 }
 0x219   : > { %v1321_v27 = vmul.f32 %v2647_v25, %v1298_v26 }
 0x21a   : > { %v1300_v28 = vpop.permute.xlu1 %1299 }
 0x21b   : > { %1337 = vrot.lane.b32.xlu0 %v1321_v27, %s2083_s23  ;;  %v1322_v38 = vmul.f32 %v2650_v62, %v1300_v28  ;;  %v2667_v49 = vpop.eup %1957 }
 0x21c   : > { %v2670_v51 = vpop.eup %1959 }
 0x21d   : > { %1339 = vrot.lane.b32.xlu1 %v1322_v38, %s2083_s23  ;;  %v1962_v58 = vpop.eup %1961 }
 0x21e   : > { %v1964_v59 = vpop.eup %1963  ;;  %v1215_v46 = vadd.f32 1.0, %v1962_v58 }
 0x21f   : > { %v1216_v41 = vadd.f32 1.0, %v1964_v59 }
 0x220   : > { %1965 = vrcp.f32 %v1215_v46 }
 0x221   : > { %1967 = vrcp.f32 %v1216_v41 }
 0x22a   : > { %v2675_v1 = vpop.eup %1965 }
 0x22b   : > { %v2678_v63 = vpop.eup %1967 }
 0x230   : > { %v1302_v35 = vpop.permute.xlu0 %1301 }
 0x231   : > { %v1323_v36 = vmul.f32 %v2657_v34, %v1302_v35 }
 0x232   : > { %v1304_v42 = vpop.permute.xlu1 %1303 }
 0x233   : > { %1341 = vrot.lane.b32.xlu0 %v1323_v36, %s2083_s23  ;;  %v1324_v15 = vmul.f32 %v2660_v12, %v1304_v42 }
 0x235   : > { %1343 = vrot.lane.b32.xlu1 %v1324_v15, %s2083_s23 }
 0x248   : > { %v1306_v7 = vpop.permute.xlu0 %1305 }
 0x249   : > { %v1325_v50 = vmul.f32 %v2667_v49, %v1306_v7 }
 0x24a   : > { %v1308_v52 = vpop.permute.xlu1 %1307 }
 0x24b   : > { %1345 = vrot.lane.b32.xlu0 %v1325_v50, %s2083_s23  ;;  %v1326_v53 = vmul.f32 %v2670_v51, %v1308_v52 }
 0x24d   : > { %1347 = vrot.lane.b32.xlu1 %v1326_v53, %s2083_s23 }
 0x260   : > { %v1310_v61 = vpop.permute.xlu0 %1309 }
 0x261   : > { %v1327_v48 = vmul.f32 %v2675_v1, %v1310_v61 }
 0x262   : > { %v1312_v60 = vpop.permute.xlu1 %1311 }
 0x263   : > { %1349 = vrot.lane.b32.xlu0 %v1327_v48, %s2083_s23  ;;  %v1328_v0 = vmul.f32 %v2678_v63, %v1312_v60 }
 0x264   : > { %v1258_v5 = vpop.permute.xlu0 %1257 }
 0x265   : > { %1351 = vrot.lane.b32.xlu1 %v1328_v0, %s2083_s23  ;;  %v1281_v4 = vmul.f32 %v2647_v25, %v1258_v5 }
 0x266   : > { %v1260_v6 = vpop.permute.xlu1 %1259 }
 0x267   : > { %v1282_v14 = vmul.f32 %v2650_v62, %v1260_v6 }
 0x268   : > { %v1262_v10 = vpop.permute.xlu0 %1261 }
 0x269   : > { %v1283_v20 = vmul.f32 %v2657_v34, %v1262_v10 }
 0x26a   : > { %v1264_v9 = vpop.permute.xlu1 %1263 }
 0x26b   : > { %v1284_v2 = vmul.f32 %v2660_v12, %v1264_v9 }
 0x26c   : > { %v1266_v54 = vpop.permute.xlu0 %1265 }
 0x26d   : > { %v1285_v26 = vmul.f32 %v2667_v49, %v1266_v54 }
 0x26e   : > { %v1268_v3 = vpop.permute.xlu1 %1267 }
 0x26f   : > { %v1286_v38 = vmul.f32 %v2670_v51, %v1268_v3 }
 0x270   : > { %v1270_v11 = vpop.permute.xlu0 %1269 }
 0x271   : > { %v1287_v33 = vmul.f32 %v2675_v1, %v1270_v11 }
 0x272   : > { %v1272_v47 = vpop.permute.xlu1 %1271 }
 0x273   : > { %v1288_v36 = vmul.f32 %v2678_v63, %v1272_v47 }
 0x28d   : > { %v1338_v37 = vpop.permute.xlu0 %1337 }
 0x28e   : > { %v1361_v13 = vadd.f32 %v1338_v37, %v1281_v4 }
 0x28f   : > { %v1340_v16 = vpop.permute.xlu1 %1339 }
 0x290   : > { %1969 = vtanh.f32 %v1361_v13  ;;  %v1362_v55 = vadd.f32 %v1340_v16, %v1282_v14 }
 0x292   : > { %1971 = vtanh.f32 %v1362_v55 }
 0x29a   : > { %v1970_v17 = vpop.eup %1969 }
 0x29b   : > { %1385 = vrot.lane.b32.xlu0 %v1970_v17, %s2083_s23 }
 0x29c   : > { %v1972_v19 = vpop.eup %1971 }
 0x29d   : > { %1387 = vrot.lane.b32.xlu1 %v1972_v19, %s2083_s23 }
 0x2a5   : > { %v1342_v21 = vpop.permute.xlu0 %1341 }
 0x2a6   : > { %v1363_v22 = vadd.f32 %v1342_v21, %v1283_v20 }
 0x2a7   : > { %v1344_v23 = vpop.permute.xlu1 %1343 }
 0x2a8   : > { %1973 = vtanh.f32 %v1363_v22  ;;  %v1364_v39 = vadd.f32 %v1344_v23, %v1284_v2 }
 0x2aa   : > { %1975 = vtanh.f32 %v1364_v39 }
 0x2b2   : > { %v1974_v24 = vpop.eup %1973 }
 0x2b3   : > { %1389 = vrot.lane.b32.xlu0 %v1974_v24, %s2083_s23 }
 0x2b4   : > { %v1976_v56 = vpop.eup %1975 }
 0x2b5   : > { %1391 = vrot.lane.b32.xlu1 %v1976_v56, %s2083_s23 }
 0x2bd   : > { %v1346_v27 = vpop.permute.xlu0 %1345 }
 0x2be   : > { %v1365_v28 = vadd.f32 %v1346_v27, %v1285_v26 }
 0x2bf   : > { %v1348_v29 = vpop.permute.xlu1 %1347 }
 0x2c0   : > { %1977 = vtanh.f32 %v1365_v28  ;;  %v1366_v32 = vadd.f32 %v1348_v29, %v1286_v38 }
 0x2c2   : > { %1979 = vtanh.f32 %v1366_v32 }
 0x2ca   : > { %v1978_v30 = vpop.eup %1977 }
 0x2cb   : > { %1393 = vrot.lane.b32.xlu0 %v1978_v30, %s2083_s23 }
 0x2cc   : > { %v1980_v31 = vpop.eup %1979 }
 0x2cd   : > { %1395 = vrot.lane.b32.xlu1 %v1980_v31, %s2083_s23 }
 0x2d5   : > { %v1350_v40 = vpop.permute.xlu0 %1349 }
 0x2d6   : > { %v1367_v35 = vadd.f32 %v1350_v40, %v1287_v33 }
 0x2d7   : > { %v1352_v42 = vpop.permute.xlu1 %1351 }
 0x2d8   : > { %1981 = vtanh.f32 %v1367_v35  ;;  %v1368_v15 = vadd.f32 %v1352_v42, %v1288_v36 }
 0x2da   : > { %1983 = vtanh.f32 %v1368_v15 }
 0x2e2   : > { %v1982_v18 = vpop.eup %1981 }
 0x2e3   : > { %1397 = vrot.lane.b32.xlu0 %v1982_v18, %s2083_s23 }
 0x2e4   : > { %v1984_v8 = vpop.eup %1983 }
 0x2e5   : > { %1399 = vrot.lane.b32.xlu1 %v1984_v8, %s2083_s23  ;;  %s1540_s23 = sshll.u32 %s2205_s20, 4  ;;  %s2751_s23 = int_to_ptr.vmem [resolvable:$true] %s1540_s23 }
 0x2e6   : > { %s1985_s13 = scalar_lea.vmem %s2751_s23, 1024  ;;  %p1992_p5 = scmp.lt.s32.totalorder %s2751_s23, %s1990_s16 }
 0x2e7   : > { %1425 = vrot.lane.b32.xlu0 %v1361_v13, %s2085_s14  ;;  %p1986_p1 = scmp.ne.s32.totalorder %s2751_s23, %s1985_s13  ;;  %p1993_p6 = scmp.lt.s32.totalorder %s1991_s17, %s1985_s13 }
 0x2e9   : > { %1427 = vrot.lane.b32.xlu1 %v1362_v55, %s2085_s14  ;;  %p1987_p2 = pnand %p1986_p1, %p2168_p3  ;;  %p1994_p7 = por %p1993_p6, %p1992_p5 }
 0x2eb   : > { %1429 = vrot.lane.b32.xlu0 %v1363_v22, %s2085_s14  ;;  %p1988_p4 = pneg %p1987_p2 }
 0x2ed   : > { %1431 = vrot.lane.b32.xlu1 %v1364_v39, %s2085_s14  ;;  %p1995_p8 = pnand %p1994_p7, %p1988_p4 }
 0x2ef   : > { %1433 = vrot.lane.b32.xlu0 %v1365_v28, %s2085_s14 }
 0x2f1   : > { %1435 = vrot.lane.b32.xlu1 %v1366_v32, %s2085_s14 }
 0x2f3   : > { %1437 = vrot.lane.b32.xlu0 %v1367_v35, %s2085_s14 }
 0x2f5   : > { %1439 = vrot.lane.b32.xlu1 %v1368_v15, %s2085_s14 }
 0x30d   : > { %v1386_v43 = vpop.permute.xlu0 %1385 }
 0x30e   : > { %v1409_v44 = vmul.f32 %v2647_v25, %v1386_v43 }
 0x30f   : > { %v1388_v45 = vpop.permute.xlu1 %1387 }
 0x310   : > { %1465 = vrot.lane.b32.xlu0 %v1409_v44, %s2082_s21  ;;  %v1410_v57 = vmul.f32 %v2650_v62, %v1388_v45 }
 0x312   : > { %1467 = vrot.lane.b32.xlu1 %v1410_v57, %s2082_s21 }
 0x325   : > { %v1390_v7 = vpop.permute.xlu0 %1389 }
 0x326   : > { %v1411_v50 = vmul.f32 %v2657_v34, %v1390_v7 }
 0x327   : > { %v1392_v52 = vpop.permute.xlu1 %1391 }
 0x328   : > { %1469 = vrot.lane.b32.xlu0 %v1411_v50, %s2082_s21  ;;  %v1412_v53 = vmul.f32 %v2660_v12, %v1392_v52 }
 0x32a   : > { %1471 = vrot.lane.b32.xlu1 %v1412_v53, %s2082_s21 }
 0x33d   : > { %v1394_v58 = vpop.permute.xlu0 %1393 }
 0x33e   : > { %v1413_v25 = vmul.f32 %v2667_v49, %v1394_v58 }
 0x33f   : > { %v1396_v59 = vpop.permute.xlu1 %1395 }
 0x340   : > { %1473 = vrot.lane.b32.xlu0 %v1413_v25, %s2082_s21  ;;  %v1414_v62 = vmul.f32 %v2670_v51, %v1396_v59 }
 0x342   : > { %1475 = vrot.lane.b32.xlu1 %v1414_v62, %s2082_s21 }
 0x355   : > { %v1398_v34 = vpop.permute.xlu0 %1397 }
 0x356   : > { %v1415_v46 = vmul.f32 %v2675_v1, %v1398_v34 }
 0x357   : > { %v1400_v41 = vpop.permute.xlu1 %1399 }
 0x358   : > { %1477 = vrot.lane.b32.xlu0 %v1415_v46, %s2082_s21  ;;  %v1416_v12 = vmul.f32 %v2678_v63, %v1400_v41 }
 0x359   : > { %v1426_v49 = vpop.permute.xlu0 %1425 }
 0x35a   : > { %1449 = vst.msk [vmem:[#allocation3] sm:$0xff] %vm549_vm2, %v1426_v49  ;;  %1506 = vst.msk [vmem:[%s2205_s20] sm:$0xff] %vm549_vm2, %v1426_v49  ;;  %1479 = vrot.lane.b32.xlu1 %v1416_v12, %s2082_s21  ;;  %s1745_s21 = sshll.u32 %s2067_s22, 10  ;;  %s2853_s22 = sand.u32 1, %s2055_s19  }
 0x35b   : > { %v1428_v51 = vpop.permute.xlu1 %1427  ;;  %s2749_s11 = scalar_lea.hbm %s2839_s5, %s1745_s21  ;;  %s2758_s12 = scalar_lea.sflag [#allocation5], %s2853_s22 }
 0x35c   : > { %1450 = vst.msk [vmem:[#allocation3 + $0x8] sm:$0xff] %vm549_vm2, %v1428_v51  ;;  %1507 = vst.msk [vmem:[%s2205_s20 + $0x8] sm:$0xff] %vm549_vm2, %v1428_v51 }
 0x35d   : > { %v1430_v1 = vpop.permute.xlu0 %1429 }
 0x35e   : > { %1451 = vst.msk [vmem:[#allocation3 + $0x10] sm:$0xff] %vm549_vm2, %v1430_v1  ;;  %1508 = vst.msk [vmem:[%s2205_s20 + $0x10] sm:$0xff] %vm549_vm2, %v1430_v1 }
 0x35f   : > { %v1432_v61 = vpop.permute.xlu1 %1431 }
 0x360   : > { %1452 = vst.msk [vmem:[#allocation3 + $0x18] sm:$0xff] %vm549_vm2, %v1432_v61  ;;  %1509 = vst.msk [vmem:[%s2205_s20 + $0x18] sm:$0xff] %vm549_vm2, %v1432_v61 }
 0x361   : > { %v1434_v48 = vpop.permute.xlu0 %1433 }
 0x362   : > { %1453 = vst.msk [vmem:[#allocation3 + $0x20] sm:$0xff] %vm549_vm2, %v1434_v48  ;;  %1510 = vst.msk [vmem:[%s2205_s20 + $0x20] sm:$0xff] %vm549_vm2, %v1434_v48 }
 0x363   : > { %v1436_v63 = vpop.permute.xlu1 %1435 }
 0x364   : > { %1454 = vst.msk [vmem:[#allocation3 + $0x28] sm:$0xff] %vm549_vm2, %v1436_v63  ;;  %1511 = vst.msk [vmem:[%s2205_s20 + $0x28] sm:$0xff] %vm549_vm2, %v1436_v63 }
 0x365   : > { %v1438_v60 = vpop.permute.xlu0 %1437 }
 0x366   : > { %1455 = vst.msk [vmem:[#allocation3 + $0x30] sm:$0xff] %vm549_vm2, %v1438_v60  ;;  %1512 = vst.msk [vmem:[%s2205_s20 + $0x30] sm:$0xff] %vm549_vm2, %v1438_v60 }
 0x367   : > { %v1440_v0 = vpop.permute.xlu1 %1439 }
 0x368   : > { %1456 = vst.msk [vmem:[#allocation3 + $0x38] sm:$0xff] %vm549_vm2, %v1440_v0  ;;  %1513 = vst.msk [vmem:[%s2205_s20 + $0x38] sm:$0xff] %vm549_vm2, %v1440_v0 }
 0x369   : > { %1998 = shalt.err (!%p1995_p8)
}
 0x36a   : > { %s1999_s20 = scalar_lea.hbm %s2749_s11, 1024  ;;  %s2003_s7 = scalar_lea.hbm %s2839_s5, 2048 }
 0x36b   : > { %p2000_p10 = scmp.ne.s32.totalorder %s2749_s11, %s1999_s20  ;;  %p2004_p13 = scmp.lt.u32.totalorder %s2749_s11, %s2839_s5 }
 0x36c   : > { %p2005_p0 = scmp.lt.u32.totalorder %s2003_s7, %s1999_s20  ;;  %p2007_p2 = scmp.lt.u32.totalorder %s1999_s20, %s2749_s11 }
 0x36d   : > { %p2001_p11 = pnand %p2000_p10, %p2168_p3 }
 0x36e   : > { %p2006_p1 = por %p2005_p0, %p2004_p13 }
 0x36f   : > { %p2002_p12 = pneg %p2001_p11 }
 0x370   : > { %p2008_p4 = por %p2007_p2, %p2006_p1 }
 0x372   : > { %p2009_p5 = pnand %p2008_p4, %p2002_p12 }
 0x374   : > { %2012 = shalt.err (!%p2009_p5)
}
 0x375   : > { %s2087_s24 = smov 128   ;;  %s2088_s29 = smov 8  }
 0x376   : > { %1804 = dma.vmem_to_hbm [thread:$0]  (%p2168_p3), %s2751_s23, 1024, %s2749_s11, %s2758_s12, %s2087_s24, %s2087_s24, %s2088_s29  }
 0x382   : > { %v1466_v5 = vpop.permute.xlu0 %1465 }
 0x383   : > { %1490 = vst.msk [vmem:[#allocation2 + $0x11] sm:$0xff] %vm549_vm2, %v1466_v5  ;;  %1498 = vst.msk [vmem:[%s2203_s10] sm:$0xff] %vm549_vm2, %v1466_v5 }
 0x384   : > { %v1468_v6 = vpop.permute.xlu1 %1467 }
 0x385   : > { %1491 = vst.msk [vmem:[#allocation2 + $0x21] sm:$0xff] %vm549_vm2, %v1468_v6  ;;  %1499 = vst.msk [vmem:[%s2203_s10 + $0x8] sm:$0xff] %vm549_vm2, %v1468_v6 }
 0x39a   : > { %v1470_v10 = vpop.permute.xlu0 %1469 }
 0x39b   : > { %1492 = vst.msk [vmem:[#allocation2 + $0x31] sm:$0xff] %vm549_vm2, %v1470_v10  ;;  %1500 = vst.msk [vmem:[%s2203_s10 + $0x10] sm:$0xff] %vm549_vm2, %v1470_v10 }
 0x39c   : > { %v1472_v9 = vpop.permute.xlu1 %1471 }
 0x39d   : > { %1493 = vst.msk [vmem:[#allocation2 + $0x41] sm:$0xff] %vm549_vm2, %v1472_v9  ;;  %1501 = vst.msk [vmem:[%s2203_s10 + $0x18] sm:$0xff] %vm549_vm2, %v1472_v9 }
 0x3b2   : > { %v1474_v54 = vpop.permute.xlu0 %1473 }
 0x3b3   : > { %1494 = vst.msk [vmem:[#allocation2 + $0x51] sm:$0xff] %vm549_vm2, %v1474_v54  ;;  %1502 = vst.msk [vmem:[%s2203_s10 + $0x20] sm:$0xff] %vm549_vm2, %v1474_v54 }
 0x3b4   : > { %v1476_v3 = vpop.permute.xlu1 %1475 }
 0x3b5   : > { %1495 = vst.msk [vmem:[#allocation2 + $0x61] sm:$0xff] %vm549_vm2, %v1476_v3  ;;  %1503 = vst.msk [vmem:[%s2203_s10 + $0x28] sm:$0xff] %vm549_vm2, %v1476_v3 }
 0x3ca   : > { %v1478_v11 = vpop.permute.xlu0 %1477 }
 0x3cb   : > { %1496 = vst.msk [vmem:[#allocation2 + $0x71] sm:$0xff] %vm549_vm2, %v1478_v11  ;;  %1504 = vst.msk [vmem:[%s2203_s10 + $0x30] sm:$0xff] %vm549_vm2, %v1478_v11 }
 0x3cc   : > { %v1480_v4 = vpop.permute.xlu1 %1479 }
 0x3cd   : > { %1497 = vst.msk [vmem:[#allocation2 + $0x81] sm:$0xff] %vm549_vm2, %v1480_v4  ;;  %1505 = vst.msk [vmem:[%s2203_s10 + $0x38] sm:$0xff] %vm549_vm2, %v1480_v4 }
 0x3ce PF: > { %p1810_p3 = scmp.ge.s32.totalorder %s2079_s25, 2  ;;  %s1567_s30 = sand.u32 1, %s2051_s18  }
 0x3cf   : > { %s1568_s21 = scalar_lea.sflag [#allocation5], %s1567_s30 }
 0x3d0   : > { %p1807_p6 = pnand %p1810_p3, %p2178_p9 }
 0x3d2   : > { %2046 = dma.done.wait (!%p1807_p6), %s1568_s21, 1024  }
 0x3d3   : > { %2048 = vsyncadd (!%p1807_p6), %s1568_s21, 4294966272  ;;  %s19_s25 = sadd.s32 1, %s2079_s25   ;;  %s2854_s23 = sld [smem:[#allocation7_spill]] }
 0x3d4   : > { %p16_p7 = scmp.ge.s32.totalorder %s19_s25, 18   ;;  %s2855_s20 = sld [smem:[#allocation12_spill]] }
 0x3d5   : > { %s2856_s21 = sld [smem:[#allocation8_spill]]  ;;  %s2857_s22 = sld [smem:[#allocation9_spill]] }
 0x3d6   : > { %s2858_s10 = sld [smem:[#allocation10_spill]]  ;;  %s2859_s24 = sld [smem:[#allocation11_spill]] }
 0x3d7   : > { %s2860_s18 = smov %s2055_s19  ;;  %18 = sbr.rel (!%p16_p7) target bundleno = 5 (0x5), region = 88 }
 0x3d9   : > { %s2861_s19 = smov %s2854_s23 }
 0x3dc   : > { %s2862_s23 = smov %s2858_s10 }
 0x3de   :  { %1573 = vsyncpa [#allocation5], 1 }
 0x3df   :  { %1575 = vsyncpa [#allocation5 + $0x1], 1 }

</bundles_post_ra>
